<compile_context>
chip_gen: v7x
topology: tpu7x:2x2x1
jax: 0.10.0
libtpu: 0.0.40
codegen_flags: <defaults>
</compile_context>

<pallas_src>
import functools

import jax
import jax.numpy as jnp
import numpy as np
from jax import lax
from jax.experimental import pallas as pl
from jax.experimental.pallas import tpu as pltpu

NUM_INPUTS = 128     # feature width produced by the attention front-end
NUM_OUTPUTS = 2
HIDDEN_SIZE = 256
LOC_DIM = 5          # state_loc width
LOC_PAD = 8          # state_loc padded to one sublane group
EMB_PAD = 8          # (dx, dy) padded to one sublane group for the K=8 matmul
OUT_PAD = 8          # packed output: [value, mu0, mu1, 0, ...]


def _round_up(v, m):
    return ((v + m - 1) // m) * m


def _actor_critic_kernel(
    neigh_ref,   # (TB, NP, 8)   padded neighbor rows: [dx, dy, 0, ...]
    loc_ref,     # (TB, 8)       padded state_loc
    we_ref,      # (8, 128)      embbedLayer weight (rows >= 2 zero), f32
    be_ref,      # (1, 128)
    whw_ref,     # (128, 256)    [hlayer W | Watt[:128] column | zeros]
    bh_ref,      # (1, 128)
    waem_ref,    # (1, 128)      Watt[128:] (em projection), f32
    batt_ref,    # (1, 1)
    w2a_ref,     # (8, 128)      layer2 rows for state_loc (rows >= 5 zero), f32
    w2b_ref,     # (128, 128)    layer2 rows for mean_feature
    b2_ref,      # (1, 128)
    w1_ref,      # (128, 512)    fused [critic_l1 | actor_l1]
    b1_ref,      # (1, 512)
    wt_ref,      # (512, 8)      packed tail: col0 = Wc2, cols1..2 = Wa2
    bt_ref,      # (1, 8)
    out_ref,     # (TB, 8)       col0 = value, cols1..2 = mu
    *,
    n_real,      # static: number of real neighbors (<= NP)
):
    f32 = jnp.float32
    TB, NP, _ = neigh_ref.shape
    inv_n = 1.0 / float(n_real)

    # ---- embedding: one zero-padded K=8 MXU matmul over all TB*NP rows ----
    n2d = neigh_ref[...].reshape(TB * NP, EMB_PAD)
    e2d = jnp.maximum(
        jnp.dot(n2d.astype(we_ref.dtype), we_ref[...],
                preferred_element_type=f32) + be_ref[...], 0.0)     # (TB*NP, 128)
    e = e2d.reshape(TB, NP, NUM_INPUTS)

    if NP != n_real:  # static branch: mask padded neighbor rows
        valid = lax.broadcasted_iota(jnp.int32, (TB, NP, 1), 1) < n_real
        e = jnp.where(valid, e, 0.0)
        e2d = e.reshape(TB * NP, NUM_INPUTS)

    em = jnp.sum(e, axis=1, keepdims=True) * inv_n                  # (TB, 1, 128)

    # ---- hidden layer + attention e-projection fused into ONE wide matmul ----
    hw = jnp.dot(e2d.astype(whw_ref.dtype), whw_ref[...],
                 preferred_element_type=f32)                         # (TB*NP, 256)
    h = jnp.maximum(hw[:, :NUM_INPUTS] + bh_ref[...], 0.0)
    h = h.reshape(TB, NP, NUM_INPUTS)
    score_e = hw[:, NUM_INPUTS:NUM_INPUTS + 1].reshape(TB, NP, 1)    # e @ Watt[:128]

    score_em = jnp.sum(em * waem_ref[...].reshape(1, 1, NUM_INPUTS),
                       axis=-1, keepdims=True)                       # (TB, 1, 1)
    score = jnp.maximum(
        score_e + score_em + batt_ref[...].reshape(1, 1, 1), 0.0)    # (TB, NP, 1)
    if NP != n_real:
        score = jnp.where(valid, score, -1e30)

    # ---- per-sample softmax over the neighbor axis ----
    m = jnp.max(score, axis=1, keepdims=True)
    p = jnp.exp(score - m)
    denom = jnp.sum(p, axis=1, keepdims=True)
    inv = pl.reciprocal(denom, approx=True)        # EUP slot (off the VALU path)
    inv = inv * (2.0 - denom * inv)                # one Newton step -> ~f32 exact
    sm = p * inv                                   # (TB, NP, 1)

    mean_feature = jnp.sum(sm * h, axis=1) * inv_n                   # (TB, 128)

    # ---- layer2: loc branch + mean_feature branch, each one batched matmul ----
    nextx = jnp.maximum(
        jnp.dot(loc_ref[...].astype(w2a_ref.dtype), w2a_ref[...],
                preferred_element_type=f32)
        + jnp.dot(mean_feature.astype(w2b_ref.dtype), w2b_ref[...],
                  preferred_element_type=f32)
        + b2_ref[...], 0.0)                                          # (TB, 128)

    # ---- fused critic/actor heads ----
    hh = jnp.maximum(
        jnp.dot(nextx.astype(w1_ref.dtype), w1_ref[...],
                preferred_element_type=f32) + b1_ref[...], 0.0)      # (TB, 512)
    out_ref[...] = (
        jnp.dot(hh.astype(wt_ref.dtype), wt_ref[...],
                preferred_element_type=f32) + bt_ref[...])           # (TB, 8)


def init_params(key):
    """Deterministic params mirroring init_weights: W ~ N(0, 0.1), b = 0.1, log_std = 0."""
    ks = jax.random.split(key, 16)
    n = lambda k, shape: (0.1 * jax.random.normal(k, shape)).astype(jnp.float32)
    b = lambda shape: jnp.full(shape, 0.1, jnp.float32)
    return {
        "We": n(ks[0], (2, NUM_INPUTS)),            "be": b((NUM_INPUTS,)),
        "Wh": n(ks[1], (NUM_INPUTS, NUM_INPUTS)),   "bh": b((NUM_INPUTS,)),
        "Watt": n(ks[2], (2 * NUM_INPUTS, 1)),      "batt": b((1,)),
        "W2": n(ks[3], (NUM_INPUTS + LOC_DIM, NUM_INPUTS)), "b2": b((NUM_INPUTS,)),
        "Wc1": n(ks[4], (NUM_INPUTS, HIDDEN_SIZE)), "bc1": b((HIDDEN_SIZE,)),
        "Wc2": n(ks[5], (HIDDEN_SIZE, 1)),          "bc2": b((1,)),
        "Wa1": n(ks[6], (NUM_INPUTS, HIDDEN_SIZE)), "ba1": b((HIDDEN_SIZE,)),
        "Wa2": n(ks[7], (HIDDEN_SIZE, NUM_OUTPUTS)), "ba2": b((NUM_OUTPUTS,)),
        "log_std": jnp.zeros((1, NUM_OUTPUTS), jnp.float32),
    }


def prepare_params(params, use_bf16=True):
    """One-time weight packing/casting into the kernel layout.

    Call once outside the per-step path; the returned dict is what
    actor_critic_forward consumes (no packing ops re-run per call).
    """
    f32 = jnp.float32
    mm = jnp.bfloat16 if use_bf16 else f32
    p = {k: jnp.asarray(v, f32) for k, v in params.items()}

    we = jnp.zeros((EMB_PAD, NUM_INPUTS), f32).at[:2].set(p["We"])
    whw = jnp.zeros((NUM_INPUTS, 2 * NUM_INPUTS), f32)
    whw = whw.at[:, :NUM_INPUTS].set(p["Wh"])
    whw = whw.at[:, NUM_INPUTS].set(p["Watt"][:NUM_INPUTS, 0])      # folded score col
    w2a = jnp.zeros((LOC_PAD, NUM_INPUTS), f32).at[:LOC_DIM].set(p["W2"][:LOC_DIM])
    w2b = p["W2"][LOC_DIM:]
    w1 = jnp.concatenate([p["Wc1"], p["Wa1"]], axis=1)              # (128, 512)
    b1 = jnp.concatenate([p["bc1"], p["ba1"]]).reshape(1, 2 * HIDDEN_SIZE)
    wt = jnp.zeros((2 * HIDDEN_SIZE, OUT_PAD), f32)
    wt = wt.at[:HIDDEN_SIZE, 0].set(p["Wc2"][:, 0])
    wt = wt.at[HIDDEN_SIZE:, 1:1 + NUM_OUTPUTS].set(p["Wa2"])
    bt = jnp.zeros((1, OUT_PAD), f32)
    bt = bt.at[0, 0].set(p["bc2"][0])
    bt = bt.at[0, 1:1 + NUM_OUTPUTS].set(p["ba2"])

    packed = {
        "we": we,                                      # f32: tiny K=8 matmul
        "be": p["be"].reshape(1, NUM_INPUTS),
        "whw": whw.astype(mm),
        "bh": p["bh"].reshape(1, NUM_INPUTS),
        "wa_em": p["Watt"][NUM_INPUTS:, 0].reshape(1, NUM_INPUTS),
        "batt": p["batt"].reshape(1, 1),
        "w2a": w2a,                                    # f32: tiny K=8 matmul
        "w2b": w2b.astype(mm),
        "b2": p["b2"].reshape(1, NUM_INPUTS),
        "w1": w1.astype(mm),
        "b1": b1,
        "wt": wt.astype(mm),
        "bt": bt,
        "std": jnp.exp(p["log_std"]),
    }
    return jax.tree_util.tree_map(jax.block_until_ready, packed)


def _choose_tile_b(B):
    if B <= 8:
        return 8
    if B <= 512:
        # >= 2 grid steps so v7x's 2 TensorCores both get work.
        return _round_up(-(-B // 2), 8)
    return 256  # fills the 256-wide v6e/v7x MXU; grid stays >= 3


@functools.partial(jax.jit, static_argnames=("num_neighbors",))
def actor_critic_forward(x, packed, num_neighbors):
    """Returns (mu, std, value), matching ActorCritic.forward_attention."""
    B = x.shape[0]
    N = int(num_neighbors)
    NP = _round_up(max(N, 1), 8)
    f32 = jnp.float32
    x = x.astype(f32)

    TILE_B = _choose_tile_b(B)
    Bp = _round_up(B, TILE_B)
    grid = (Bp // TILE_B,)

    # ---- per-call glue: only pad/split activations (weights are pre-packed) ----
    loc = jnp.zeros((Bp, LOC_PAD), f32).at[:B, :LOC_DIM].set(x[:, :LOC_DIM])
    neigh = jnp.zeros((Bp, NP, EMB_PAD), f32)
    neigh = neigh.at[:B, :N, :2].set(x[:, LOC_DIM:].reshape(B, N, 2))

    const2 = lambda b: (0, 0)
    in_specs = [
        pl.BlockSpec((TILE_B, NP, EMB_PAD), lambda b: (b, 0, 0)),
        pl.BlockSpec((TILE_B, LOC_PAD), lambda b: (b, 0)),
        pl.BlockSpec((EMB_PAD, NUM_INPUTS), const2),
        pl.BlockSpec((1, NUM_INPUTS), const2),
        pl.BlockSpec((NUM_INPUTS, 2 * NUM_INPUTS), const2),
        pl.BlockSpec((1, NUM_INPUTS), const2),
        pl.BlockSpec((1, NUM_INPUTS), const2),
        pl.BlockSpec((1, 1), const2),
        pl.BlockSpec((LOC_PAD, NUM_INPUTS), const2),
        pl.BlockSpec((NUM_INPUTS, NUM_INPUTS), const2),
        pl.BlockSpec((1, NUM_INPUTS), const2),
        pl.BlockSpec((NUM_INPUTS, 2 * HIDDEN_SIZE), const2),
        pl.BlockSpec((1, 2 * HIDDEN_SIZE), const2),
        pl.BlockSpec((2 * HIDDEN_SIZE, OUT_PAD), const2),
        pl.BlockSpec((1, OUT_PAD), const2),
    ]

    out = pl.pallas_call(
        functools.partial(_actor_critic_kernel, n_real=N),
        out_shape=jax.ShapeDtypeStruct((Bp, OUT_PAD), f32),
        grid=grid,
        in_specs=in_specs,
        out_specs=pl.BlockSpec((TILE_B, OUT_PAD), lambda b: (b, 0)),
        compiler_params=pltpu.CompilerParams(
            dimension_semantics=("parallel",)),
    )(neigh, loc,
      packed["we"], packed["be"], packed["whw"], packed["bh"],
      packed["wa_em"], packed["batt"], packed["w2a"], packed["w2b"],
      packed["b2"], packed["w1"], packed["b1"], packed["wt"], packed["bt"])

    value = out[:B, 0:1]
    mu = out[:B, 1:1 + NUM_OUTPUTS]
    std = jnp.broadcast_to(packed["std"], mu.shape)
    return mu, std, value


def _reference_forward(x, p, N):
    """Pure-JAX reference of forward_attention for verification."""
    B = x.shape[0]
    rows = []
    for i in range(B):
        state_loc = x[i:i + 1, :LOC_DIM]
        temp = x[i, LOC_DIM:].reshape(N, 2)
        e = jax.nn.relu(temp @ p["We"] + p["be"])
        em = jnp.broadcast_to(jnp.mean(e, axis=0, keepdims=True), e.shape)
        h = jax.nn.relu(e @ p["Wh"] + p["bh"])
        score = jax.nn.relu(jnp.hstack([e, em]) @ p["Watt"] + p["batt"])
        feature = jax.nn.softmax(score, axis=0) * h
        mean_feature = jnp.mean(feature, axis=0, keepdims=True)
        t = jax.nn.relu(jnp.hstack([state_loc, mean_feature]) @ p["W2"] + p["b2"])
        rows.append(t)
    nextx = jnp.vstack(rows)
    value = jax.nn.relu(nextx @ p["Wc1"] + p["bc1"]) @ p["Wc2"] + p["bc2"]
    mu = jax.nn.relu(nextx @ p["Wa1"] + p["ba1"]) @ p["Wa2"] + p["ba2"]
    std = jnp.broadcast_to(jnp.exp(p["log_std"]), mu.shape)
    return mu, std, value


if __name__ == "__main__":
    key = jax.random.PRNGKey(0)
    k_param, k_x, k_x2 = jax.random.split(key, 3)

    # ---- case 1: batch of 2, 8 neighbor (dx, dy) pairs ----
    B, N = 2, 8
    params = init_params(k_param)
    x = jax.random.normal(k_x, (B, LOC_DIM + 2 * N), jnp.float32)
    mu_ref, std_ref, value_ref = _reference_forward(x, params, N)

    # fp32 path (exact): tight check
    packed_f32 = prepare_params(params, use_bf16=False)
    mu, std, value = actor_critic_forward(x, packed_f32, num_neighbors=N)
    jax.block_until_ready((mu, std, value))
    np.testing.assert_allclose(np.asarray(mu), np.asarray(mu_ref), rtol=1e-4, atol=1e-4)
    np.testing.assert_allclose(np.asarray(value), np.asarray(value_ref), rtol=1e-4, atol=1e-4)
    np.testing.assert_allclose(np.asarray(std), np.asarray(std_ref), rtol=1e-6, atol=1e-6)

    # bf16 MXU-weight path (default fast path): looser tolerance
    packed_bf16 = prepare_params(params)
    mu_b, std_b, value_b = actor_critic_forward(x, packed_bf16, num_neighbors=N)
    jax.block_until_ready((mu_b, std_b, value_b))
    np.testing.assert_allclose(np.asarray(mu_b), np.asarray(mu_ref), rtol=5e-2, atol=5e-2)
    np.testing.assert_allclose(np.asarray(value_b), np.asarray(value_ref), rtol=5e-2, atol=5e-2)

    # ---- case 2: B=16 (two grid steps), N=5 (exercises neighbor padding+mask) ----
    B2, N2 = 16, 5
    x2 = jax.random.normal(k_x2, (B2, LOC_DIM + 2 * N2), jnp.float32)
    mu2, std2, value2 = actor_critic_forward(x2, packed_f32, num_neighbors=N2)
    jax.block_until_ready((mu2, std2, value2))
    mu2_ref, std2_ref, value2_ref = _reference_forward(x2, params, N2)
    np.testing.assert_allclose(np.asarray(mu2), np.asarray(mu2_ref), rtol=1e-4, atol=1e-4)
    np.testing.assert_allclose(np.asarray(value2), np.asarray(value2_ref), rtol=1e-4, atol=1e-4)

    print("KERNEL_OK")
</pallas_src>

<mosaic_0001>
module attributes {stable_mosaic.version = 11 : i64} {
  func.func @_actor_critic_kernel(%arg0: i32, %arg1: memref<8x8x8xf32, #tpu.memory_space<vmem>>, %arg2: memref<8x8xf32, #tpu.memory_space<vmem>>, %arg3: memref<8x128xf32, #tpu.memory_space<vmem>>, %arg4: memref<1x128xf32, #tpu.memory_space<vmem>>, %arg5: memref<128x256xf32, #tpu.memory_space<vmem>>, %arg6: memref<1x128xf32, #tpu.memory_space<vmem>>, %arg7: memref<1x128xf32, #tpu.memory_space<vmem>>, %arg8: memref<1x1xf32, #tpu.memory_space<vmem>>, %arg9: memref<8x128xf32, #tpu.memory_space<vmem>>, %arg10: memref<128x128xf32, #tpu.memory_space<vmem>>, %arg11: memref<1x128xf32, #tpu.memory_space<vmem>>, %arg12: memref<128x512xf32, #tpu.memory_space<vmem>>, %arg13: memref<1x512xf32, #tpu.memory_space<vmem>>, %arg14: memref<512x8xf32, #tpu.memory_space<vmem>>, %arg15: memref<1x8xf32, #tpu.memory_space<vmem>>, %arg16: memref<8x8xf32, #tpu.memory_space<vmem>>) attributes {dimension_semantics = [#tpu.dimension_semantics<parallel>], iteration_bounds = array<i64: 1>, scalar_prefetch = 0 : i64, scratch_operands = 0 : i64, tpu.core_type = #tpu.core_type<tc>, window_params = [{transform_indices = @transform_0, window_bounds = array<i64: 8, 8, 8>}, {transform_indices = @transform_1, window_bounds = array<i64: 8, 8>}, {pipeline_mode = #tpu.pipeline_mode<synchronous>, transform_indices = @transform_2, window_bounds = array<i64: 8, 128>}, {pipeline_mode = #tpu.pipeline_mode<synchronous>, transform_indices = @transform_3, window_bounds = array<i64: 1, 128>}, {pipeline_mode = #tpu.pipeline_mode<synchronous>, transform_indices = @transform_4, window_bounds = array<i64: 128, 256>}, {pipeline_mode = #tpu.pipeline_mode<synchronous>, transform_indices = @transform_5, window_bounds = array<i64: 1, 128>}, {pipeline_mode = #tpu.pipeline_mode<synchronous>, transform_indices = @transform_6, window_bounds = array<i64: 1, 128>}, {pipeline_mode = #tpu.pipeline_mode<synchronous>, transform_indices = @transform_7, window_bounds = array<i64: 1, 1>}, {pipeline_mode = #tpu.pipeline_mode<synchronous>, transform_indices = @transform_8, window_bounds = array<i64: 8, 128>}, {pipeline_mode = #tpu.pipeline_mode<synchronous>, transform_indices = @transform_9, window_bounds = array<i64: 128, 128>}, {pipeline_mode = #tpu.pipeline_mode<synchronous>, transform_indices = @transform_10, window_bounds = array<i64: 1, 128>}, {pipeline_mode = #tpu.pipeline_mode<synchronous>, transform_indices = @transform_11, window_bounds = array<i64: 128, 512>}, {pipeline_mode = #tpu.pipeline_mode<synchronous>, transform_indices = @transform_12, window_bounds = array<i64: 1, 512>}, {pipeline_mode = #tpu.pipeline_mode<synchronous>, transform_indices = @transform_13, window_bounds = array<i64: 512, 8>}, {pipeline_mode = #tpu.pipeline_mode<synchronous>, transform_indices = @transform_14, window_bounds = array<i64: 1, 8>}, {transform_indices = @transform_15, window_bounds = array<i64: 8, 8>}]} {
    %c0 = arith.constant 0 : index
    %c0_0 = arith.constant 0 : index
    %c0_1 = arith.constant 0 : index
    %0 = vector.load %arg1[%c0, %c0_0, %c0_1] : memref<8x8x8xf32, #tpu.memory_space<vmem>>, vector<8x8x8xf32>
    %1 = vector.shape_cast %0 : vector<8x8x8xf32> to vector<64x8xf32>
    %c0_2 = arith.constant 0 : index
    %c0_3 = arith.constant 0 : index
    %2 = vector.load %arg3[%c0_2, %c0_3] : memref<8x128xf32, #tpu.memory_space<vmem>>, vector<8x128xf32>
    %cst = arith.constant dense<0.000000e+00> : vector<64x128xf32>
    %3 = tpu.matmul %1, %2, %cst {dimension_numbers = #tpu.dot_dimension_numbers<[1], [0], [0], [1], [0, 0, 1, 1], [], []>} : vector<64x8xf32>, vector<8x128xf32>, vector<64x128xf32> -> vector<64x128xf32>
    %c0_4 = arith.constant 0 : index
    %c0_5 = arith.constant 0 : index
    %4 = vector.load %arg4[%c0_4, %c0_5] : memref<1x128xf32, #tpu.memory_space<vmem>>, vector<1x128xf32>
    %5 = vector.broadcast %4 : vector<1x128xf32> to vector<64x128xf32>
    %6 = arith.addf %3, %5 : vector<64x128xf32>
    %cst_6 = arith.constant 0.000000e+00 : f32
    %7 = vector.broadcast %cst_6 : f32 to vector<64x128xf32>
    %8 = arith.maximumf %6, %7 : vector<64x128xf32>
    %9 = vector.shape_cast %8 : vector<64x128xf32> to vector<8x8x128xf32>
    %cst_7 = arith.constant dense<0.000000e+00> : vector<8x128xf32>
    %10 = vector.multi_reduction <add>, %9, %cst_7 [1] : vector<8x8x128xf32> to vector<8x128xf32>
    %11 = vector.shape_cast %10 : vector<8x128xf32> to vector<8x1x128xf32>
    %cst_8 = arith.constant 1.250000e-01 : f32
    %12 = vector.broadcast %cst_8 : f32 to vector<8x1x128xf32>
    %13 = arith.mulf %11, %12 : vector<8x1x128xf32>
    %c0_9 = arith.constant 0 : index
    %c0_10 = arith.constant 0 : index
    %14 = vector.load %arg5[%c0_9, %c0_10] : memref<128x256xf32, #tpu.memory_space<vmem>>, vector<128x256xf32>
    %cst_11 = arith.constant dense<0.000000e+00> : vector<64x256xf32>
    %15 = tpu.matmul %8, %14, %cst_11 {dimension_numbers = #tpu.dot_dimension_numbers<[1], [0], [0], [1], [0, 0, 1, 1], [], []>} : vector<64x128xf32>, vector<128x256xf32>, vector<64x256xf32> -> vector<64x256xf32>
    %16 = vector.extract_strided_slice %15 {offsets = [0, 0], sizes = [64, 128], strides = [1, 1]} : vector<64x256xf32> to vector<64x128xf32>
    %c0_12 = arith.constant 0 : index
    %c0_13 = arith.constant 0 : index
    %17 = vector.load %arg6[%c0_12, %c0_13] : memref<1x128xf32, #tpu.memory_space<vmem>>, vector<1x128xf32>
    %18 = vector.broadcast %17 : vector<1x128xf32> to vector<64x128xf32>
    %19 = arith.addf %16, %18 : vector<64x128xf32>
    %cst_14 = arith.constant 0.000000e+00 : f32
    %20 = vector.broadcast %cst_14 : f32 to vector<64x128xf32>
    %21 = arith.maximumf %19, %20 : vector<64x128xf32>
    %22 = vector.shape_cast %21 : vector<64x128xf32> to vector<8x8x128xf32>
    %23 = vector.extract_strided_slice %15 {offsets = [0, 128], sizes = [64, 1], strides = [1, 1]} : vector<64x256xf32> to vector<64x1xf32>
    %24 = vector.shape_cast %23 : vector<64x1xf32> to vector<8x8x1xf32>
    %c0_15 = arith.constant 0 : index
    %c0_16 = arith.constant 0 : index
    %25 = vector.load %arg7[%c0_15, %c0_16] : memref<1x128xf32, #tpu.memory_space<vmem>>, vector<1x128xf32>
    %26 = vector.shape_cast %25 : vector<1x128xf32> to vector<1x1x128xf32>
    %27 = vector.broadcast %26 : vector<1x1x128xf32> to vector<8x1x128xf32>
    %28 = arith.mulf %13, %27 : vector<8x1x128xf32>
    %cst_17 = arith.constant dense<0.000000e+00> : vector<8x1xf32>
    %29 = vector.multi_reduction <add>, %28, %cst_17 [2] : vector<8x1x128xf32> to vector<8x1xf32>
    %30 = vector.shape_cast %29 : vector<8x1xf32> to vector<8x1x1xf32>
    %31 = vector.broadcast %30 : vector<8x1x1xf32> to vector<8x8x1xf32>
    %32 = arith.addf %24, %31 : vector<8x8x1xf32>
    %c0_18 = arith.constant 0 : index
    %c0_19 = arith.constant 0 : index
    %33 = vector.load %arg8[%c0_18, %c0_19] : memref<1x1xf32, #tpu.memory_space<vmem>>, vector<1x1xf32>
    %34 = vector.shape_cast %33 : vector<1x1xf32> to vector<1x1x1xf32>
    %35 = vector.broadcast %34 : vector<1x1x1xf32> to vector<8x8x1xf32>
    %36 = arith.addf %32, %35 : vector<8x8x1xf32>
    %cst_20 = arith.constant 0.000000e+00 : f32
    %37 = vector.broadcast %cst_20 : f32 to vector<8x8x1xf32>
    %38 = arith.maximumf %36, %37 : vector<8x8x1xf32>
    %cst_21 = arith.constant dense<0xFF800000> : vector<8x1xf32>
    %39 = vector.multi_reduction <maximumf>, %38, %cst_21 [1] : vector<8x8x1xf32> to vector<8x1xf32>
    %40 = vector.shape_cast %39 : vector<8x1xf32> to vector<8x1x1xf32>
    %41 = vector.broadcast %40 : vector<8x1x1xf32> to vector<8x8x1xf32>
    %42 = arith.subf %38, %41 : vector<8x8x1xf32>
    %43 = math.exp %42 : vector<8x8x1xf32>
    %cst_22 = arith.constant dense<0.000000e+00> : vector<8x1xf32>
    %44 = vector.multi_reduction <add>, %43, %cst_22 [1] : vector<8x8x1xf32> to vector<8x1xf32>
    %45 = vector.shape_cast %44 : vector<8x1xf32> to vector<8x1x1xf32>
    %46 = tpu.reciprocal %45 {approx = true} : vector<8x1x1xf32> -> vector<8x1x1xf32>
    %47 = arith.mulf %45, %46 : vector<8x1x1xf32>
    %cst_23 = arith.constant 2.000000e+00 : f32
    %48 = vector.broadcast %cst_23 : f32 to vector<8x1x1xf32>
    %49 = arith.subf %48, %47 : vector<8x1x1xf32>
    %50 = arith.mulf %46, %49 : vector<8x1x1xf32>
    %51 = vector.broadcast %50 : vector<8x1x1xf32> to vector<8x8x1xf32>
    %52 = arith.mulf %43, %51 : vector<8x8x1xf32>
    %53 = vector.broadcast %52 : vector<8x8x1xf32> to vector<8x8x128xf32>
    %54 = arith.mulf %53, %22 : vector<8x8x128xf32>
    %cst_24 = arith.constant dense<0.000000e+00> : vector<8x128xf32>
    %55 = vector.multi_reduction <add>, %54, %cst_24 [1] : vector<8x8x128xf32> to vector<8x128xf32>
    %cst_25 = arith.constant 1.250000e-01 : f32
    %56 = vector.broadcast %cst_25 : f32 to vector<8x128xf32>
    %57 = arith.mulf %55, %56 : vector<8x128xf32>
    %c0_26 = arith.constant 0 : index
    %c0_27 = arith.constant 0 : index
    %58 = vector.load %arg2[%c0_26, %c0_27] : memref<8x8xf32, #tpu.memory_space<vmem>>, vector<8x8xf32>
    %c0_28 = arith.constant 0 : index
    %c0_29 = arith.constant 0 : index
    %59 = vector.load %arg9[%c0_28, %c0_29] : memref<8x128xf32, #tpu.memory_space<vmem>>, vector<8x128xf32>
    %cst_30 = arith.constant dense<0.000000e+00> : vector<8x128xf32>
    %60 = tpu.matmul %58, %59, %cst_30 {dimension_numbers = #tpu.dot_dimension_numbers<[1], [0], [0], [1], [0, 0, 1, 1], [], []>} : vector<8x8xf32>, vector<8x128xf32>, vector<8x128xf32> -> vector<8x128xf32>
    %c0_31 = arith.constant 0 : index
    %c0_32 = arith.constant 0 : index
    %61 = vector.load %arg10[%c0_31, %c0_32] : memref<128x128xf32, #tpu.memory_space<vmem>>, vector<128x128xf32>
    %cst_33 = arith.constant dense<0.000000e+00> : vector<8x128xf32>
    %62 = tpu.matmul %57, %61, %cst_33 {dimension_numbers = #tpu.dot_dimension_numbers<[1], [0], [0], [1], [0, 0, 1, 1], [], []>} : vector<8x128xf32>, vector<128x128xf32>, vector<8x128xf32> -> vector<8x128xf32>
    %63 = arith.addf %60, %62 : vector<8x128xf32>
    %c0_34 = arith.constant 0 : index
    %c0_35 = arith.constant 0 : index
    %64 = vector.load %arg11[%c0_34, %c0_35] : memref<1x128xf32, #tpu.memory_space<vmem>>, vector<1x128xf32>
    %65 = vector.broadcast %64 : vector<1x128xf32> to vector<8x128xf32>
    %66 = arith.addf %63, %65 : vector<8x128xf32>
    %cst_36 = arith.constant 0.000000e+00 : f32
    %67 = vector.broadcast %cst_36 : f32 to vector<8x128xf32>
    %68 = arith.maximumf %66, %67 : vector<8x128xf32>
    %c0_37 = arith.constant 0 : index
    %c0_38 = arith.constant 0 : index
    %69 = vector.load %arg12[%c0_37, %c0_38] : memref<128x512xf32, #tpu.memory_space<vmem>>, vector<128x512xf32>
    %cst_39 = arith.constant dense<0.000000e+00> : vector<8x512xf32>
    %70 = tpu.matmul %68, %69, %cst_39 {dimension_numbers = #tpu.dot_dimension_numbers<[1], [0], [0], [1], [0, 0, 1, 1], [], []>} : vector<8x128xf32>, vector<128x512xf32>, vector<8x512xf32> -> vector<8x512xf32>
    %c0_40 = arith.constant 0 : index
    %c0_41 = arith.constant 0 : index
    %71 = vector.load %arg13[%c0_40, %c0_41] : memref<1x512xf32, #tpu.memory_space<vmem>>, vector<1x512xf32>
    %72 = vector.broadcast %71 : vector<1x512xf32> to vector<8x512xf32>
    %73 = arith.addf %70, %72 : vector<8x512xf32>
    %cst_42 = arith.constant 0.000000e+00 : f32
    %74 = vector.broadcast %cst_42 : f32 to vector<8x512xf32>
    %75 = arith.maximumf %73, %74 : vector<8x512xf32>
    %c0_43 = arith.constant 0 : index
    %c0_44 = arith.constant 0 : index
    %76 = vector.load %arg14[%c0_43, %c0_44] : memref<512x8xf32, #tpu.memory_space<vmem>>, vector<512x8xf32>
    %cst_45 = arith.constant dense<0.000000e+00> : vector<8x8xf32>
    %77 = tpu.matmul %75, %76, %cst_45 {dimension_numbers = #tpu.dot_dimension_numbers<[1], [0], [0], [1], [0, 0, 1, 1], [], []>} : vector<8x512xf32>, vector<512x8xf32>, vector<8x8xf32> -> vector<8x8xf32>
    %c0_46 = arith.constant 0 : index
    %c0_47 = arith.constant 0 : index
    %78 = vector.load %arg15[%c0_46, %c0_47] : memref<1x8xf32, #tpu.memory_space<vmem>>, vector<1x8xf32>
    %79 = vector.broadcast %78 : vector<1x8xf32> to vector<8x8xf32>
    %80 = arith.addf %77, %79 : vector<8x8xf32>
    %c0_48 = arith.constant 0 : index
    %c0_49 = arith.constant 0 : index
    %81 = vector.load %arg16[%c0_48, %c0_49] : memref<8x8xf32, #tpu.memory_space<vmem>>, vector<8x8xf32>
    tpu.vector_store %arg16[%c0_48, %c0_49], %80 {strides = array<i32>} : memref<8x8xf32, #tpu.memory_space<vmem>>, vector<8x8xf32>,
    return
  }
  func.func @transform_0(%arg0: i32) -> (i32, i32, i32) {
    %c0_i32 = arith.constant 0 : i32
    %c0_i32_0 = arith.constant 0 : i32
    %c0_i32_1 = arith.constant 0 : i32
    return %arg0, %c0_i32, %c0_i32_0 : i32, i32, i32
  }
  func.func @transform_1(%arg0: i32) -> (i32, i32) {
    %c0_i32 = arith.constant 0 : i32
    %c0_i32_0 = arith.constant 0 : i32
    return %arg0, %c0_i32 : i32, i32
  }
  func.func @transform_2(%arg0: i32) -> (i32, i32) {
    %c0_i32 = arith.constant 0 : i32
    %c0_i32_0 = arith.constant 0 : i32
    %c0_i32_1 = arith.constant 0 : i32
    return %c0_i32, %c0_i32_0 : i32, i32
  }
  func.func @transform_3(%arg0: i32) -> (i32, i32) {
    %c0_i32 = arith.constant 0 : i32
    %c0_i32_0 = arith.constant 0 : i32
    %c0_i32_1 = arith.constant 0 : i32
    return %c0_i32, %c0_i32_0 : i32, i32
  }
  func.func @transform_4(%arg0: i32) -> (i32, i32) {
    %c0_i32 = arith.constant 0 : i32
    %c0_i32_0 = arith.constant 0 : i32
    %c0_i32_1 = arith.constant 0 : i32
    return %c0_i32, %c0_i32_0 : i32, i32
  }
  func.func @transform_5(%arg0: i32) -> (i32, i32) {
    %c0_i32 = arith.constant 0 : i32
    %c0_i32_0 = arith.constant 0 : i32
    %c0_i32_1 = arith.constant 0 : i32
    return %c0_i32, %c0_i32_0 : i32, i32
  }
  func.func @transform_6(%arg0: i32) -> (i32, i32) {
    %c0_i32 = arith.constant 0 : i32
    %c0_i32_0 = arith.constant 0 : i32
    %c0_i32_1 = arith.constant 0 : i32
    return %c0_i32, %c0_i32_0 : i32, i32
  }
  func.func @transform_7(%arg0: i32) -> (i32, i32) {
    %c0_i32 = arith.constant 0 : i32
    %c0_i32_0 = arith.constant 0 : i32
    %c0_i32_1 = arith.constant 0 : i32
    return %c0_i32, %c0_i32_0 : i32, i32
  }
  func.func @transform_8(%arg0: i32) -> (i32, i32) {
    %c0_i32 = arith.constant 0 : i32
    %c0_i32_0 = arith.constant 0 : i32
    %c0_i32_1 = arith.constant 0 : i32
    return %c0_i32, %c0_i32_0 : i32, i32
  }
  func.func @transform_9(%arg0: i32) -> (i32, i32) {
    %c0_i32 = arith.constant 0 : i32
    %c0_i32_0 = arith.constant 0 : i32
    %c0_i32_1 = arith.constant 0 : i32
    return %c0_i32, %c0_i32_0 : i32, i32
  }
  func.func @transform_10(%arg0: i32) -> (i32, i32) {
    %c0_i32 = arith.constant 0 : i32
    %c0_i32_0 = arith.constant 0 : i32
    %c0_i32_1 = arith.constant 0 : i32
    return %c0_i32, %c0_i32_0 : i32, i32
  }
  func.func @transform_11(%arg0: i32) -> (i32, i32) {
    %c0_i32 = arith.constant 0 : i32
    %c0_i32_0 = arith.constant 0 : i32
    %c0_i32_1 = arith.constant 0 : i32
    return %c0_i32, %c0_i32_0 : i32, i32
  }
  func.func @transform_12(%arg0: i32) -> (i32, i32) {
    %c0_i32 = arith.constant 0 : i32
    %c0_i32_0 = arith.constant 0 : i32
    %c0_i32_1 = arith.constant 0 : i32
    return %c0_i32, %c0_i32_0 : i32, i32
  }
  func.func @transform_13(%arg0: i32) -> (i32, i32) {
    %c0_i32 = arith.constant 0 : i32
    %c0_i32_0 = arith.constant 0 : i32
    %c0_i32_1 = arith.constant 0 : i32
    return %c0_i32, %c0_i32_0 : i32, i32
  }
  func.func @transform_14(%arg0: i32) -> (i32, i32) {
    %c0_i32 = arith.constant 0 : i32
    %c0_i32_0 = arith.constant 0 : i32
    %c0_i32_1 = arith.constant 0 : i32
    return %c0_i32, %c0_i32_0 : i32, i32
  }
  func.func @transform_15(%arg0: i32) -> (i32, i32) {
    %c0_i32 = arith.constant 0 : i32
    %c0_i32_0 = arith.constant 0 : i32
    return %arg0, %c0_i32 : i32, i32
  }
}

</mosaic_0001>

<bundles_post_ra>
// kernel: actor_critic_forward.1
= control target key start
LH: loop header
LB: loop body
LE: loop exit
PB: predicated region body
PF: predicated region fallthrough
CT: control target
= control target key end

     0   :  { %s2618_s0 = inlined_call_operand.vmem [shape: f32[8,8,8], index: 0, kind: input, shape index: {}]   ;;  %s2619_s1 = inlined_call_operand.vmem [shape: f32[8,8], index: 1, kind: input, shape index: {}]   ;;  %s2620_s2 = inlined_call_operand.vmem [shape: f32[8,128], index: 2, kind: input, shape index: {}]   ;;  %s2621_s3 = inlined_call_operand.vmem [shape: f32[1,128], index: 3, kind: input, shape index: {}]   ;;  %s2622_s4 = inlined_call_operand.hbm [shape: f32[128,256], index: 4, kind: input, shape index: {}]   ;;  %s2623_s5 = inlined_call_operand.vmem [shape: f32[1,128], index: 5, kind: input, shape index: {}]   ;;  %s2624_s6 = inlined_call_operand.vmem [shape: f32[1,128], index: 6, kind: input, shape index: {}]   ;;  %s2625_s7 = inlined_call_operand.<no memory space> [shape: f32[1,1], index: 7, kind: input, shape index: {}]   ;;  %s2626_s8 = inlined_call_operand.vmem [shape: f32[8,128], index: 8, kind: input, shape index: {}]   ;;  %s2627_s9 = inlined_call_operand.vmem [shape: f32[128,128], index: 9, kind: input, shape index: {}]   ;;  %s2628_s10 = inlined_call_operand.vmem [shape: f32[1,128], index: 10, kind: input, shape index: {}]   ;;  %s2629_s11 = inlined_call_operand.vmem [shape: f32[128,512], index: 11, kind: input, shape index: {}]   ;;  %s2630_s12 = inlined_call_operand.vmem [shape: f32[1,512], index: 12, kind: input, shape index: {}]   ;;  %s2631_s13 = inlined_call_operand.vmem [shape: f32[512,8], index: 13, kind: input, shape index: {}]   ;;  %s2632_s14 = inlined_call_operand.vmem [shape: f32[1,8], index: 14, kind: input, shape index: {}]   ;;  %s2633_s15 = inlined_call_operand.vmem [shape: f32[8,8], index: 15, kind: output, shape index: {}]  }
   0x1   :  { %v20_v0 = vstv %s2625_s7 }
   0x2   :  { %21 = vst [vmem:[#allocation2] sm:$0x1] %v20_v0 }
   0x3   :  { %22 = vsyncpa [#allocation4], 0  ;;  %s1879_s20 = smov [#allocation3]   ;;  %s1855_s24 = scalar_lea.hbm %s2622_s4, 4096 }
   0x4   :  { %s36_s21 = sshll.u32 %s1879_s20, 4  ;;  %p1856_p0 = scmp.ne.s32.totalorder %s2622_s4, %s1855_s24  ;;  %s37_s21 = int_to_ptr.vmem [resolvable:$true] %s36_s21 }
   0x5   :  { %p1859_p1 = scmp.lt.u32.totalorder %s1855_s24, %s2622_s4 }
   0x7   :  { %p1861_p2 = pnand %p1859_p1, %p1856_p0 }
   0x9   :  { %1864 = shalt.err (!%p1861_p2)
}
   0xa   :  { %s1865_s7 = scalar_lea.vmem %s37_s21, 4096  ;;  %p1870_p4 = scmp.lt.s32.totalorder %s37_s21, %s37_s21 }
   0xb   :  { %p1866_p3 = scmp.ne.s32.totalorder %s37_s21, %s1865_s7  ;;  %p1871_p5 = scmp.lt.s32.totalorder %s1865_s7, %s1865_s7 }
   0xd   :  { %p1872_p6 = por %p1871_p5, %p1870_p4 }
   0xf   :  { %p1873_p7 = pnand %p1872_p6, %p1866_p3 }
  0x11   :  { %1876 = shalt.err (!%p1873_p7)
}
  0x12   :  { %s1880_s29 = smov 256   ;;  %s1881_s30 = smov 16  }
  0x13   :  { %42 = dma.hbm_to_vmem [thread:$0]  %s2622_s4, 4096, %s37_s21, [#allocation4], %s1880_s29, %s1880_s29, %s1881_s30  }
  0x14   :  { %1877 = dma.done.wait [#allocation4], 4096  }
  0x15   :  { %1878 = vsyncadd [#allocation4], 4294963200  ;;  %vm82_vm0 = vcmask 64512   ;;  %v74_v1 = vld [vmem:[%s2620_s2] sm:$0xff]  ;;  %v67_v3 = vld [vmem:[%s2618_s0 + $0x8] sm:$0xff]  ;;  %v1882_v58 = vmov 0.0  }
  0x16   :  { %v66_v2 = vld [vmem:[%s2618_s0] sm:$0xff]  ;;  %1576 = vmatprep.subr.mxu1 %v74_v1  ;;  %v68_v4 = vld [vmem:[%s2618_s0 + $0x10] sm:$0xff]  ;;  %v69_v5 = vld [vmem:[%s2618_s0 + $0x18] sm:$0xff]  ;;  %vm453_vm1 = vcmask 1040384   ;;  %vm541_vm2 = vcmask 7168   ;;  %vm1885_vm3 = vmmov 0  }
  0x17   :  { %1578 = vmatprep.mubr.msk.f32.mxu1 %vm82_vm0, %v66_v2  ;;  %1577 = vmatpush3.msra.mxu1 %v74_v1  ;;  %v277_v6 = vld [vmem:[#allocation3 + $0x8] sm:$0xff]  ;;  %v279_v7 = vld [vmem:[#allocation3 + $0x18] sm:$0xff]  ;;  %v276_v8 = vld [vmem:[#allocation3] sm:$0xff]  ;;  %vm848_vm4 = vcmask 1041409   ;;  %vm850_vm5 = vcmask 1042434   ;;  %vm852_vm6 = vcmask 1043459  }
  0x18   :  { %1579 = vmatmul.mubr.msk.f32.vlgmr.msra.gmra.mrb[0].mxu1 %vm82_vm0, %v67_v3  ;;  %v1630_v9 = vpack.c.bf16 %v279_v7, %v277_v6  ;;  %v278_v10 = vld [vmem:[#allocation3 + $0x10] sm:$0xff]  ;;  %v281_v11 = vld [vmem:[#allocation3 + $0x28] sm:$0xff]  ;;  %v283_v12 = vld [vmem:[#allocation3 + $0x38] sm:$0xff]  ;;  %1622 = vmatprep.mubr.msk.f32.mxu0 %vm1885_vm3, %v1882_v58  ;;  %vm854_vm7 = vcmask 1044484   ;;  %vm856_vm8 = vcmask 1045509   ;;  %vm858_vm9 = vcmask 1046534  }
  0x19   :  { %1581 = vmatprep.mubr.msk.f32.mxu1 %vm82_vm0, %v68_v4  ;;  %v70_v13 = vld [vmem:[%s2618_s0 + $0x20] sm:$0xff]  ;;  %v1632_v14 = vpack.c.bf16 %v278_v10, %v276_v8  ;;  %v1634_v15 = vpack.c.bf16 %v283_v12, %v281_v11  ;;  %v282_v17 = vld [vmem:[#allocation3 + $0x30] sm:$0xff]  ;;  %v285_v18 = vld [vmem:[#allocation3 + $0x48] sm:$0xff]  ;;  %vm860_vm10 = vcmask 1047559  }
  0x1a   :  { %v280_v16 = vld [vmem:[#allocation3 + $0x20] sm:$0xff]  ;;  %1631 = vmatprep.subr.bf16.mxu1 %v1630_v9  ;;  %v287_v19 = vld [vmem:[#allocation3 + $0x58] sm:$0xff]  ;;  %v72_v22 = vld [vmem:[%s2618_s0 + $0x30] sm:$0xff] }
  0x1b   :  { %v71_v20 = vld [vmem:[%s2618_s0 + $0x28] sm:$0xff]  ;;  %1633 = vmatpush1.bf16.msra.mxu1 %v1632_v14  ;;  %v1636_v21 = vpack.c.bf16 %v282_v17, %v280_v16  ;;  %v1638_v23 = vpack.c.bf16 %v287_v19, %v285_v18  ;;  %v286_v25 = vld [vmem:[#allocation3 + $0x50] sm:$0xff]  ;;  %v291_v27 = vld [vmem:[#allocation3 + $0x78] sm:$0xff] }
  0x1c   :  { %1582 = vmatmul.mubr.msk.f32.gmra.mrb[2].mxu1 %vm82_vm0, %v69_v5  ;;  %1635 = vmatprep.subr.bf16.mxu1 %v1634_v15  ;;  %v284_v24 = vld [vmem:[#allocation3 + $0x40] sm:$0xff]  ;;  %v289_v26 = vld [vmem:[#allocation3 + $0x68] sm:$0xff]  ;;  %v73_v28 = vld [vmem:[%s2618_s0 + $0x38] sm:$0xff] }
  0x1d   :  { %1584 = vmatprep.mubr.msk.f32.mxu1 %vm82_vm0, %v70_v13  ;;  %v1640_v29 = vpack.c.bf16 %v286_v25, %v284_v24  ;;  %v1642_v30 = vpack.c.bf16 %v291_v27, %v289_v26  ;;  %v288_v31 = vld [vmem:[#allocation3 + $0x60] sm:$0xff]  ;;  %v290_v32 = vld [vmem:[#allocation3 + $0x70] sm:$0xff]  ;;  %v293_v33 = vld [vmem:[#allocation3 + $0x88] sm:$0xff] }
  0x1e   :  { %v295_v34 = vld [vmem:[#allocation3 + $0x98] sm:$0xff]  ;;  %v1644_v35 = vpack.c.bf16 %v290_v32, %v288_v31  ;;  %v292_v37 = vld [vmem:[#allocation3 + $0x80] sm:$0xff]  ;;  %v294_v38 = vld [vmem:[#allocation3 + $0x90] sm:$0xff] }
  0x1f   :  { %1637 = vmatpush1.bf16.msra.mxu1 %v1636_v21  ;;  %v1646_v36 = vpack.c.bf16 %v295_v34, %v293_v33  ;;  %v297_v39 = vld [vmem:[#allocation3 + $0xa8] sm:$0xff]  ;;  %v299_v40 = vld [vmem:[#allocation3 + $0xb8] sm:$0xff]  ;;  %v1648_v41 = vpack.c.bf16 %v294_v38, %v292_v37  ;;  %v296_v43 = vld [vmem:[#allocation3 + $0xa0] sm:$0xff] }
  0x20   :  { %1585 = vmatmul.mubr.msk.f32.gmra.mrb[4].mxu1 %vm82_vm0, %v71_v20  ;;  %1639 = vmatprep.subr.bf16.mxu1 %v1638_v23  ;;  %v1650_v42 = vpack.c.bf16 %v299_v40, %v297_v39  ;;  %v298_v44 = vld [vmem:[#allocation3 + $0xb0] sm:$0xff]  ;;  %v301_v45 = vld [vmem:[#allocation3 + $0xc8] sm:$0xff]  ;;  %v303_v46 = vld [vmem:[#allocation3 + $0xd8] sm:$0xff] }
  0x21   :  { %1587 = vmatprep.mubr.msk.f32.mxu1 %vm82_vm0, %v72_v22  ;;  %v1652_v47 = vpack.c.bf16 %v298_v44, %v296_v43  ;;  %v1654_v48 = vpack.c.bf16 %v303_v46, %v301_v45  ;;  %v300_v49 = vld [vmem:[#allocation3 + $0xc0] sm:$0xff]  ;;  %v302_v50 = vld [vmem:[#allocation3 + $0xd0] sm:$0xff]  ;;  %v305_v52 = vld [vmem:[#allocation3 + $0xe8] sm:$0xff] }
  0x22   :  { %v1656_v51 = vpack.c.bf16 %v302_v50, %v300_v49  ;;  %v307_v53 = vld [vmem:[#allocation3 + $0xf8] sm:$0xff]  ;;  %v304_v55 = vld [vmem:[#allocation3 + $0xe0] sm:$0xff]  ;;  %v306_v56 = vld [vmem:[#allocation3 + $0xf0] sm:$0xff] }
  0x23   :  { %1641 = vmatpush1.bf16.msra.mxu1 %v1640_v29  ;;  %v1658_v54 = vpack.c.bf16 %v307_v53, %v305_v52  ;;  %v1660_v57 = vpack.c.bf16 %v306_v56, %v304_v55  ;;  %v1464_v59 = vld [vmem:[%s2621_s3] ss:$0 sm:$0xff] }
  0x24   :  { %1588 = vmatmul.mubr.msk.f32.gmra.mrb[6].mxu1 %vm82_vm0, %v73_v28  ;;  %1643 = vmatprep.subr.bf16.mxu1 %v1642_v30 }
  0x25   :  { %372 = vmatprep.mubr.f32.mxu1 %v1882_v58 }
  0x27   :  { %1645 = vmatpush1.bf16.msra.mxu1 %v1644_v35 }
  0x28   :  { %1647 = vmatprep.subr.bf16.mxu1 %v1646_v36 }
  0x2b   :  { %1649 = vmatpush1.bf16.msra.mxu1 %v1648_v41 }
  0x2c   :  { %1651 = vmatprep.subr.bf16.mxu1 %v1650_v42  ;;  %v444_v42 = vld [vmem:[%s2624_s6] sm:$0x1] }
  0x2f   :  { %1653 = vmatpush1.bf16.msra.mxu1 %v1652_v47 }
  0x30   :  { %1655 = vmatprep.subr.bf16.mxu1 %v1654_v48 }
  0x33   :  { %1657 = vmatpush1.bf16.msra.mxu1 %v1656_v51 }
  0x34   :  { %1659 = vmatprep.subr.bf16.mxu1 %v1658_v54 }
  0x37   :  { %1661 = vmatpush1.bf16.msra.mxu1 %v1660_v57 }
  0xeb   :  { %v1580_v60 = vpop.f32.mrb[0].mxu1 }
  0xec   :  { %v179_v61 = vadd.f32 %v1580_v60, %v1464_v59  ;;  %v173_v62 = vpop.f32.mrb[1].mxu1 }
  0xed   :  { %v174_v63 = vadd.f32 %v1464_v59, %v173_v62 }
  0xee   :  { %v213_v0 = vmax.f32 %v179_v61, 0.0 }
  0xef   :  { %v212_v1 = vmax.f32 %v174_v63, 0.0  ;;  %v1583_v2 = vpop.f32.mrb[2].mxu1 }
  0xf0   :  { %v226_v3 = vrot.slane %v213_v0, 4  ;;  %v189_v4 = vadd.f32 %v1583_v2, %v1464_v59  ;;  %v183_v5 = vpop.f32.mrb[3].mxu1 }
  0xf1   :  { %v220_v6 = vrot.slane %v212_v1, 4  ;;  %v184_v7 = vadd.f32 %v1464_v59, %v183_v5  ;;  %373 = vmatmul.mubr.f32.vlgmr.msra.gmra.mrb[8].mxu1 %v212_v1 }
  0xf2   :  { %v227_v8 = vadd.f32 %v226_v3, %v213_v0  ;;  %v215_v9 = vmax.f32 %v189_v4, 0.0  ;;  %378 = vmatprep.mubr.f32.mxu1 %v1882_v58 }
  0xf3   :  { %v221_v10 = vadd.f32 %v220_v6, %v212_v1  ;;  %v214_v11 = vmax.f32 %v184_v7, 0.0  ;;  %v1586_v12 = vpop.f32.mrb[4].mxu1 }
  0xf4   :  { %v228_v13 = vrot.slane %v227_v8, 2  ;;  %v238_v14 = vrot.slane %v215_v9, 4  ;;  %v199_v15 = vadd.f32 %v1586_v12, %v1464_v59  ;;  %v193_v16 = vpop.f32.mrb[5].mxu1 }
  0xf5   :  { %v222_v17 = vrot.slane %v221_v10, 2  ;;  %v232_v18 = vrot.slane %v214_v11, 4  ;;  %v194_v19 = vadd.f32 %v1464_v59, %v193_v16  ;;  %379 = vmatmul.mubr.f32.gmra.mrb[10].mxu1 %v213_v0 }
  0xf6   :  { %v239_v20 = vadd.f32 %v238_v14, %v215_v9  ;;  %v2021_v21 = vmax.f32 %v199_v15, 0.0  ;;  %384 = vmatprep.mubr.f32.mxu1 %v1882_v58  ;;  %v229_v22 = vadd.f32 %v228_v13, %v227_v8 }
  0xf7   :  { %v233_v23 = vadd.f32 %v232_v18, %v214_v11  ;;  %v216_v24 = vmax.f32 %v194_v19, 0.0  ;;  %v1589_v25 = vpop.f32.mrb[6].mxu1  ;;  %v223_v26 = vadd.f32 %v222_v17, %v221_v10 }
  0xf8   :  { %v240_v27 = vrot.slane %v239_v20, 2  ;;  %v250_v28 = vrot.slane %v2021_v21, 4  ;;  %v209_v29 = vadd.f32 %v1589_v25, %v1464_v59  ;;  %v203_v30 = vpop.f32.mrb[7].mxu1  ;;  %v230_v31 = vrot.slane %v229_v22, 1 }
  0xf9   :  { %v234_v32 = vrot.slane %v233_v23, 2  ;;  %v244_v33 = vrot.slane %v216_v24, 4  ;;  %385 = vmatmul.mubr.f32.gmra.mrb[12].mxu1 %v214_v11  ;;  %v204_v34 = vadd.f32 %v1464_v59, %v203_v30  ;;  %v224_v35 = vrot.slane %v223_v26, 1 }
  0xfa   :  { %v251_v36 = vadd.f32 %v250_v28, %v2021_v21  ;;  %v2026_v37 = vmax.f32 %v209_v29, 0.0  ;;  %390 = vmatprep.mubr.f32.mxu1 %v1882_v58  ;;  %v231_v38 = vadd.f32 %v230_v31, %v229_v22  ;;  %v241_v39 = vadd.f32 %v240_v27, %v239_v20 }
  0xfb   :  { %v245_v40 = vadd.f32 %v244_v33, %v216_v24  ;;  %v218_v41 = vmax.f32 %v204_v34, 0.0  ;;  %v225_v43 = vadd.f32 %v224_v35, %v223_v26  ;;  %v235_v44 = vadd.f32 %v234_v32, %v233_v23 }
  0xfc   :  { %v252_v45 = vrot.slane %v251_v36, 2  ;;  %v262_v46 = vrot.slane %v2026_v37, 4  ;;  %v269_v47 = vmul.f32 0.125, %v231_v38  ;;  %v242_v48 = vrot.slane %v241_v39, 1 }
  0xfd   :  { %v246_v49 = vrot.slane %v245_v40, 2  ;;  %v256_v50 = vrot.slane %v218_v41, 4  ;;  %391 = vmatmul.mubr.f32.gmra.mrb[14].mxu1 %v215_v9  ;;  %v268_v51 = vmul.f32 0.125, %v225_v43  ;;  %v236_v52 = vrot.slane %v235_v44, 1 }
  0xfe   :  { %v263_v53 = vadd.f32 %v262_v46, %v2026_v37  ;;  %396 = vmatprep.mubr.f32.mxu1 %v1882_v58  ;;  %v446_v54 = vmul.f32 %v444_v42, %v269_v47  ;;  %v243_v55 = vadd.f32 %v242_v48, %v241_v39  ;;  %v253_v56 = vadd.f32 %v252_v45, %v251_v36 }
  0xff   :  { %v257_v57 = vadd.f32 %v256_v50, %v218_v41  ;;  %v237_v59 = vadd.f32 %v236_v52, %v235_v44  ;;  %v247_v60 = vadd.f32 %v246_v49, %v245_v40  ;;  %v445_v2 = vmul.f32 %v444_v42, %v268_v51  ;;  %v2057_v40 = vld [vmem:[#allocation2] ss:$0 sm:$0xff] }
 0x100   :  { %v264_v61 = vrot.slane %v263_v53, 2  ;;  %v457_v62 = vsel %vm453_vm1, %v446_v54, 0.0  ;;  %v271_v63 = vmul.f32 0.125, %v243_v55  ;;  %v254_v0 = vrot.slane %v253_v56, 1 }
 0x101   :  { %v258_v1 = vrot.slane %v257_v57, 2  ;;  %458 = vadd.xlane.f32.xlu0 %v457_v62  ;;  %397 = vmatmul.mubr.f32.gmra.mrb[16].mxu1 %v216_v24  ;;  %v270_v3 = vmul.f32 0.125, %v237_v59  ;;  %v248_v4 = vrot.slane %v247_v60, 1  ;;  %v454_v14 = vsel %vm453_vm1, %v445_v2, 0.0 }
 0x102   :  { %402 = vmatprep.mubr.f32.mxu1 %v1882_v58  ;;  %v448_v5 = vmul.f32 %v444_v42, %v271_v63  ;;  %v255_v6 = vadd.f32 %v254_v0, %v253_v56  ;;  %v265_v7 = vadd.f32 %v264_v61, %v263_v53  ;;  %v1883_v30 = vmov 0  }
 0x103   :  { %v249_v8 = vadd.f32 %v248_v4, %v247_v60  ;;  %v259_v9 = vadd.f32 %v258_v1, %v257_v57  ;;  %v447_v11 = vmul.f32 %v444_v42, %v270_v3  ;;  %1821 = vset.pattern.permute.xlu0 %v1883_v30  ;;  %1822 = vset.pattern.permute.xlu1 %v1883_v30  ;;  %v478_v31 = vlaneseq }
 0x104   :  { %v463_v10 = vsel %vm453_vm1, %v448_v5, 0.0  ;;  %v273_v12 = vmul.f32 0.125, %v255_v6  ;;  %v266_v13 = vrot.slane %v265_v7, 1 }
 0x105   :  { %464 = vadd.xlane.f32.xlu1 %v463_v10  ;;  %403 = vmatmul.mubr.f32.gmra.mrb[18].mxu1 %v2021_v21  ;;  %v272_v15 = vmul.f32 0.125, %v249_v8  ;;  %v260_v16 = vrot.slane %v259_v9, 1  ;;  %v460_v20 = vsel %vm453_vm1, %v447_v11, 0.0  ;;  %v2049_v33 = vshrl.u32 %v478_v31, 7 }
 0x106   :  { %455 = vadd.xlane.f32.xlu0 %v454_v14  ;;  %408 = vmatprep.mubr.f32.mxu1 %v1882_v58  ;;  %v267_v17 = vadd.f32 %v266_v13, %v265_v7  ;;  %v450_v22 = vmul.f32 %v444_v42, %v273_v12 }
 0x107   :  { %v449_v18 = vmul.f32 %v444_v42, %v272_v15  ;;  %v261_v19 = vadd.f32 %v260_v16, %v259_v9  ;;  %v2052_v35 = vsub.s32 0, %v2049_v33 }
 0x108   :  { %v275_v23 = vmul.f32 0.125, %v267_v17  ;;  %v469_v27 = vsel %vm453_vm1, %v450_v22, 0.0 }
 0x109   :  { %461 = vadd.xlane.f32.xlu1 %v460_v20  ;;  %409 = vmatmul.mubr.f32.gmra.mrb[20].mxu1 %v218_v41  ;;  %v466_v24 = vsel %vm453_vm1, %v449_v18, 0.0  ;;  %v274_v25 = vmul.f32 0.125, %v261_v19 }
 0x10a   :  { %467 = vadd.xlane.f32.xlu0 %v466_v24  ;;  %414 = vmatprep.mubr.f32.mxu1 %v1882_v58  ;;  %v452_v21 = vmul.f32 %v444_v42, %v275_v23 }
 0x10b   :  { %v451_v26 = vmul.f32 %v444_v42, %v274_v25 }
 0x10c   :  { %v475_v29 = vsel %vm453_vm1, %v452_v21, 0.0 }
 0x10d   :  { %470 = vadd.xlane.f32.xlu1 %v469_v27  ;;  %415 = vmatmul.mubr.f32.gmra.mrb[22].mxu1 %v2026_v37  ;;  %v472_v28 = vsel %vm453_vm1, %v451_v26, 0.0 }
 0x10e   :  { %473 = vadd.xlane.f32.xlu0 %v472_v28  ;;  %1165 = vmatprep.mubr.f32.mxu1 %v1882_v58 }
 0x111   :  { %476 = vadd.xlane.f32.xlu1 %v475_v29 }
 0x18e   :  { %v459_v32 = vpop.xlane.xlu0 %458 }
 0x18f   :  { %v485_v42 = vrot.slane %v459_v32, %v2052_v35 }
 0x192   :  { %v465_v36 = vpop.xlane.xlu1 %464 }
 0x193   :  { %v456_v34 = vpop.xlane.xlu0 %455  ;;  %v493_v59 = vrot.slane %v465_v36, %v2052_v35 }
 0x194   :  { %v481_v37 = vrot.slane %v456_v34, %v2052_v35 }
 0x196   :  { %v462_v45 = vpop.xlane.xlu1 %461 }
 0x197   :  { %v489_v49 = vrot.slane %v462_v45, %v2052_v35  ;;  %v468_v63 = vpop.xlane.xlu0 %467 }
 0x198   :  { %v497_v7 = vrot.slane %v468_v63, %v2052_v35 }
 0x19a   :  { %v471_v11 = vpop.xlane.xlu1 %470 }
 0x19b   :  { %v501_v22 = vrot.slane %v471_v11, %v2052_v35  ;;  %v474_v21 = vpop.xlane.xlu0 %473 }
 0x1c4   :  { %v2055_v38 = vpop.f32.mrb[8].mxu1 }
 0x1c5   :  { %v376_v39 = vpop.f32.mrb[9].mxu1 }
 0x1c6   :  { %v510_v41 = vadd.f32 %v481_v37, %v376_v39 }
 0x1c8   :  { %v525_v43 = vadd.f32 %v2057_v40, %v510_v41  ;;  %v2061_v44 = vpop.f32.mrb[10].mxu1  ;;  %v505_v41 = vrot.slane %v474_v21, %v2052_v35 }
 0x1c9   :  { %v382_v46 = vpop.f32.mrb[11].mxu1 }
 0x1ca   :  { %v533_v47 = vmax.f32 %v525_v43, 0.0  ;;  %v511_v48 = vadd.f32 %v485_v42, %v382_v46  ;;  %v477_v46 = vpop.xlane.xlu1 %476 }
 0x1cc   :  { %v542_v50 = vsel %vm541_vm2, %v533_v47, -inf  ;;  %v526_v51 = vadd.f32 %v2057_v40, %v511_v48  ;;  %v2066_v52 = vpop.f32.mrb[12].mxu1 }
 0x1cd   :  { %v543_v53 = vrot.slane %v542_v50, 4  ;;  %v388_v54 = vpop.f32.mrb[13].mxu1 }
 0x1ce   :  { %v534_v55 = vmax.f32 %v526_v51, 0.0  ;;  %v512_v56 = vadd.f32 %v489_v49, %v388_v54 }
 0x1cf   :  { %v544_v57 = vmax.f32 %v542_v50, %v543_v53 }
 0x1d0   :  { %v549_v60 = vsel %vm541_vm2, %v534_v55, -inf  ;;  %v2071_v61 = vadd.f32 %v2057_v40, %v512_v56  ;;  %v2073_v62 = vpop.f32.mrb[14].mxu1 }
 0x1d1   :  { %v545_v0 = vrot.slane %v544_v57, 2  ;;  %v550_v1 = vrot.slane %v549_v60, 4  ;;  %v394_v2 = vpop.f32.mrb[15].mxu1 }
 0x1d2   :  { %v535_v3 = vmax.f32 %v2071_v61, 0.0  ;;  %v513_v4 = vadd.f32 %v493_v59, %v394_v2 }
 0x1d3   :  { %v546_v5 = vmax.f32 %v544_v57, %v545_v0  ;;  %v551_v6 = vmax.f32 %v549_v60, %v550_v1  ;;  %v509_v60 = vrot.slane %v477_v46, %v2052_v35 }
 0x1d4   :  { %v556_v8 = vsel %vm541_vm2, %v535_v3, -inf  ;;  %v2079_v9 = vadd.f32 %v2057_v40, %v513_v4  ;;  %v2081_v10 = vpop.f32.mrb[16].mxu1 }
 0x1d5   :  { %v547_v12 = vrot.slane %v546_v5, 1  ;;  %v552_v13 = vrot.slane %v551_v6, 2  ;;  %v557_v14 = vrot.slane %v556_v8, 4  ;;  %v400_v15 = vpop.f32.mrb[17].mxu1 }
 0x1d6   :  { %v536_v16 = vmax.f32 %v2079_v9, 0.0  ;;  %v514_v17 = vadd.f32 %v497_v7, %v400_v15 }
 0x1d7   :  { %v548_v18 = vmax.f32 %v546_v5, %v547_v12  ;;  %v553_v19 = vmax.f32 %v551_v6, %v552_v13  ;;  %v558_v20 = vmax.f32 %v556_v8, %v557_v14 }
 0x1d8   :  { %v563_v23 = vsel %vm541_vm2, %v536_v16, -inf  ;;  %v2087_v24 = vadd.f32 %v2057_v40, %v514_v17  ;;  %v2089_v25 = vpop.f32.mrb[18].mxu1 }
 0x1d9   :  { %v598_v26 = vsub.f32 %v533_v47, %v548_v18  ;;  %v554_v27 = vrot.slane %v553_v19, 1  ;;  %v559_v28 = vrot.slane %v558_v20, 2  ;;  %v564_v29 = vrot.slane %v563_v23, 4  ;;  %v406_v30 = vpop.f32.mrb[19].mxu1 }
 0x1da   :  { %v537_v31 = vmax.f32 %v2087_v24, 0.0  ;;  %v515_v32 = vadd.f32 %v501_v22, %v406_v30 }
 0x1db   :  { %v606_v34 = vmul.f32 1.442695, %v598_v26  ;;  %v555_v36 = vmax.f32 %v553_v19, %v554_v27  ;;  %v560_v37 = vmax.f32 %v558_v20, %v559_v28  ;;  %v565_v39 = vmax.f32 %v563_v23, %v564_v29 }
 0x1dc   :  { %v570_v42 = vsel %vm541_vm2, %v537_v31, -inf  ;;  %v530_v43 = vadd.f32 %v2057_v40, %v515_v32  ;;  %v2095_v45 = vpop.f32.mrb[20].mxu1 }
 0x1dd   :  { %1823 = vpow2.f32 %v606_v34  ;;  %v599_v47 = vsub.f32 %v534_v55, %v555_v36  ;;  %v561_v48 = vrot.slane %v560_v37, 1  ;;  %v566_v49 = vrot.slane %v565_v39, 2  ;;  %v412_v50 = vpop.f32.mrb[21].mxu1 }
 0x1de   :  { %v571_v51 = vrot.slane %v570_v42, 4  ;;  %v538_v53 = vmax.f32 %v530_v43, 0.0  ;;  %v516_v54 = vadd.f32 %v505_v41, %v412_v50 }
 0x1df   :  { %v608_v56 = vmul.f32 1.442695, %v599_v47  ;;  %v562_v57 = vmax.f32 %v560_v37, %v561_v48  ;;  %v567_v59 = vmax.f32 %v565_v39, %v566_v49 }
 0x1e0   :  { %v572_v61 = vmax.f32 %v570_v42, %v571_v51  ;;  %v577_v63 = vsel %vm541_vm2, %v538_v53, -inf  ;;  %v531_v0 = vadd.f32 %v2057_v40, %v516_v54  ;;  %v2100_v1 = vpop.f32.mrb[22].mxu1 }
 0x1e1   :  { %1825 = vpow2.f32 %v608_v56  ;;  %v600_v55 = vsub.f32 %v535_v3, %v562_v57  ;;  %v568_v2 = vrot.slane %v567_v59, 1  ;;  %v578_v4 = vrot.slane %v577_v63, 4  ;;  %v418_v5 = vpop.f32.mrb[23].mxu1 }
 0x1e2   :  { %v573_v6 = vrot.slane %v572_v61, 2  ;;  %v539_v7 = vmax.f32 %v531_v0, 0.0  ;;  %v517_v8 = vadd.f32 %v509_v60, %v418_v5 }
 0x1e3   :  { %v610_v9 = vmul.f32 1.442695, %v600_v55  ;;  %v569_v11 = vmax.f32 %v567_v59, %v568_v2  ;;  %v579_v12 = vmax.f32 %v577_v63, %v578_v4 }
 0x1e4   :  { %v574_v13 = vmax.f32 %v572_v61, %v573_v6  ;;  %v584_v14 = vsel %vm541_vm2, %v539_v7, -inf  ;;  %v532_v15 = vadd.f32 %v2057_v40, %v517_v8 }
 0x1e5   :  { %1827 = vpow2.f32 %v610_v9  ;;  %v601_v17 = vsub.f32 %v536_v16, %v569_v11  ;;  %v580_v18 = vrot.slane %v579_v12, 2  ;;  %v585_v19 = vrot.slane %v584_v14, 4 }
 0x1e6   :  { %v575_v20 = vrot.slane %v574_v13, 1  ;;  %v540_v3 = vmax.f32 %v532_v15, 0.0 }
 0x1e7   :  { %v2104_v22 = vpop.eup %1823  ;;  %v612_v23 = vmul.f32 1.442695, %v601_v17  ;;  %v581_v24 = vmax.f32 %v579_v12, %v580_v18  ;;  %v586_v21 = vmax.f32 %v584_v14, %v585_v19 }
 0x1e8   :  { %v576_v26 = vmax.f32 %v574_v13, %v575_v20  ;;  %v591_v27 = vsel %vm541_vm2, %v540_v3, -inf  ;;  %v622_v28 = vsel %vm541_vm2, %v2104_v22, 0.0 }
 0x1e9   :  { %1829 = vpow2.f32 %v612_v23  ;;  %v582_v29 = vrot.slane %v581_v24, 1  ;;  %v587_v40 = vrot.slane %v586_v21, 2  ;;  %v592_v30 = vrot.slane %v591_v27, 4 }
 0x1ea   :  { %v602_v16 = vsub.f32 %v537_v31, %v576_v26  ;;  %v623_v32 = vrot.slane %v622_v28, 4 }
 0x1eb   :  { %v2109_v34 = vpop.eup %1825  ;;  %v583_v36 = vmax.f32 %v581_v24, %v582_v29  ;;  %v588_v37 = vmax.f32 %v586_v21, %v587_v40  ;;  %v593_v39 = vmax.f32 %v591_v27, %v592_v30 }
 0x1ec   :  { %v614_v41 = vmul.f32 1.442695, %v602_v16  ;;  %v624_v42 = vadd.f32 %v623_v32, %v622_v28  ;;  %v629_v43 = vsel %vm541_vm2, %v2109_v34, 0.0 }
 0x1ed   :  { %v603_v46 = vsub.f32 %v538_v53, %v583_v36  ;;  %v589_v47 = vrot.slane %v588_v37, 1  ;;  %v594_v48 = vrot.slane %v593_v39, 2  ;;  %v630_v49 = vrot.slane %v629_v43, 4 }
 0x1ee   :  { %1831 = vpow2.f32 %v614_v41  ;;  %v625_v50 = vrot.slane %v624_v42, 2 }
 0x1ef   :  { %v2113_v51 = vpop.eup %1827  ;;  %v616_v31 = vmul.f32 1.442695, %v603_v46  ;;  %v590_v54 = vmax.f32 %v588_v37, %v589_v47  ;;  %v595_v56 = vmax.f32 %v593_v39, %v594_v48  ;;  %v631_v57 = vadd.f32 %v630_v49, %v629_v43 }
 0x1f0   :  { %v626_v59 = vadd.f32 %v625_v50, %v624_v42  ;;  %v636_v60 = vsel %vm541_vm2, %v2113_v51, 0.0 }
 0x1f1   :  { %1833 = vpow2.f32 %v616_v31  ;;  %v604_v61 = vsub.f32 %v539_v7, %v590_v54  ;;  %v596_v63 = vrot.slane %v595_v56, 1  ;;  %v632_v0 = vrot.slane %v631_v57, 2 }
 0x1f2   :  { %v627_v53 = vrot.slane %v626_v59, 1  ;;  %v637_v55 = vrot.slane %v636_v60, 4 }
 0x1f3   :  { %v2117_v2 = vpop.eup %1829  ;;  %v618_v4 = vmul.f32 1.442695, %v604_v61  ;;  %v597_v5 = vmax.f32 %v595_v56, %v596_v63  ;;  %v633_v6 = vadd.f32 %v632_v0, %v631_v57 }
 0x1f4   :  { %v628_v8 = vadd.f32 %v627_v53, %v626_v59  ;;  %v638_v9 = vadd.f32 %v637_v55, %v636_v60  ;;  %v643_v11 = vsel %vm541_vm2, %v2117_v2, 0.0 }
 0x1f5   :  { %1835 = vpow2.f32 %v618_v4  ;;  %v605_v12 = vsub.f32 %v540_v3, %v597_v5  ;;  %v634_v13 = vrot.slane %v633_v6, 1  ;;  %v644_v14 = vrot.slane %v643_v11, 4 }
 0x1f6   :  { %1837 = vrcp.f32 %v628_v8  ;;  %v639_v7 = vrot.slane %v638_v9, 2 }
 0x1f7   :  { %v620_v15 = vmul.f32 1.442695, %v605_v12  ;;  %v635_v17 = vadd.f32 %v634_v13, %v633_v6  ;;  %v645_v18 = vadd.f32 %v644_v14, %v643_v11 }
 0x1f8   :  { %v2121_v19 = vpop.eup %1831  ;;  %v640_v20 = vadd.f32 %v639_v7, %v638_v9 }
 0x1f9   :  { %1839 = vpow2.f32 %v620_v15  ;;  %v646_v23 = vrot.slane %v645_v18, 2  ;;  %v650_v24 = vsel %vm541_vm2, %v2121_v19, 0.0 }
 0x1fa   :  { %1841 = vrcp.f32 %v635_v17  ;;  %v641_v21 = vrot.slane %v640_v20, 1  ;;  %v651_v26 = vrot.slane %v650_v24, 4 }
 0x1fb   :  { %v2125_v27 = vpop.eup %1833  ;;  %v647_v3 = vadd.f32 %v646_v23, %v645_v18 }
 0x1fc   :  { %v642_v28 = vadd.f32 %v641_v21, %v640_v20  ;;  %v652_v29 = vadd.f32 %v651_v26, %v650_v24  ;;  %v657_v40 = vsel %vm541_vm2, %v2125_v27, 0.0 }
 0x1fd   :  { %v648_v30 = vrot.slane %v647_v3, 1  ;;  %v658_v16 = vrot.slane %v657_v40, 4 }
 0x1fe   :  { %1843 = vrcp.f32 %v642_v28  ;;  %v653_v32 = vrot.slane %v652_v29, 2 }
 0x1ff   :  { %v2129_v36 = vpop.eup %1835  ;;  %v649_v37 = vadd.f32 %v648_v30, %v647_v3  ;;  %v659_v39 = vadd.f32 %v658_v16, %v657_v40 }
 0x200   :  { %v1838_v41 = vpop.eup %1837  ;;  %v654_v42 = vadd.f32 %v653_v32, %v652_v29  ;;  %v664_v43 = vsel %vm541_vm2, %v2129_v36, 0.0 }
 0x201   :  { %v686_v46 = vmul.f32 %v1838_v41, %v628_v8  ;;  %1845 = vrcp.f32 %v649_v37  ;;  %v660_v47 = vrot.slane %v659_v39, 2  ;;  %v665_v48 = vrot.slane %v664_v43, 4 }
 0x202   :  { %v655_v49 = vrot.slane %v654_v42, 1 }
 0x203   :  { %v2133_v50 = vpop.eup %1839  ;;  %v694_v31 = vsub.f32 2.0, %v686_v46  ;;  %v661_v54 = vadd.f32 %v660_v47, %v659_v39  ;;  %v666_v56 = vadd.f32 %v665_v48, %v664_v43  ;;  %v1884_v46 = vmov 0.0|0.0  }
 0x204   :  { %v1842_v57 = vpop.eup %1841  ;;  %v656_v59 = vadd.f32 %v655_v49, %v654_v42  ;;  %v671_v60 = vsel %vm541_vm2, %v2133_v50, 0.0  ;;  %1662 = vmatprep.subr.bf16.mxu0 %v1884_v46 }
 0x205   :  { %v702_v61 = vmul.f32 %v1838_v41, %v694_v31  ;;  %v687_v63 = vmul.f32 %v1842_v57, %v635_v17  ;;  %v662_v0 = vrot.slane %v661_v54, 1  ;;  %v667_v53 = vrot.slane %v666_v56, 2  ;;  %v825_v41 = vld [vmem:[%s2627_s9 + $0x8] sm:$0xff]  ;;  %v826_v31 = vld [vmem:[%s2627_s9 + $0x10] sm:$0xff] }
 0x206   :  { %1847 = vrcp.f32 %v656_v59  ;;  %v672_v55 = vrot.slane %v671_v60, 4 }
 0x207   :  { %v710_v4 = vmul.f32 %v2104_v22, %v702_v61  ;;  %v695_v5 = vsub.f32 2.0, %v687_v63  ;;  %v663_v6 = vadd.f32 %v662_v0, %v661_v54  ;;  %v668_v8 = vadd.f32 %v667_v53, %v666_v56  ;;  %v827_v54 = vld [vmem:[%s2627_s9 + $0x18] sm:$0xff]  ;;  %v828_v63 = vld [vmem:[%s2627_s9 + $0x20] sm:$0xff]  ;;  %v829_v0 = vld [vmem:[%s2627_s9 + $0x28] sm:$0xff] }
 0x208   :  { %v1844_v9 = vpop.eup %1843  ;;  %v673_v11 = vadd.f32 %v672_v55, %v671_v60  ;;  %v1666_v56 = vpack.c.bf16 %v827_v54, %v826_v31  ;;  %v1669_v55 = vpack.c.bf16 %v829_v0, %v828_v63  ;;  %v1048_v54 = vld [vmem:[%s2629_s11 + $0x108] sm:$0xff]  ;;  %v1055_v0 = vld [vmem:[%s2629_s11 + $0x140] sm:$0xff] }
 0x209   :  { %720 = vperm.xlu0 %1821, %v710_v4   ;;  %v703_v12 = vmul.f32 %v1842_v57, %v695_v5  ;;  %v688_v13 = vmul.f32 %v1844_v9, %v642_v28  ;;  %1849 = vrcp.f32 %v663_v6  ;;  %v669_v14 = vrot.slane %v668_v8, 1  ;;  %v830_v5 = vld [vmem:[%s2627_s9 + $0x30] sm:$0xff]  ;;  %v1060_v63 = vld [vmem:[%s2629_s11 + $0x168] sm:$0xff] }
 0x20a   :  { %v674_v7 = vrot.slane %v673_v11, 2 }
 0x20b   :  { %v1846_v15 = vpop.eup %1845  ;;  %v711_v17 = vmul.f32 %v2109_v34, %v703_v12  ;;  %v696_v18 = vsub.f32 2.0, %v688_v13  ;;  %v670_v20 = vadd.f32 %v669_v14, %v668_v8  ;;  %v834_v13 = vld [vmem:[%s2627_s9 + $0x50] sm:$0xff] }
 0x20c   :  { %v689_v23 = vmul.f32 %v1846_v15, %v649_v37  ;;  %v675_v24 = vadd.f32 %v674_v7, %v673_v11  ;;  %v824_v37 = vld [vmem:[%s2627_s9] sm:$0xff]  ;;  %v833_v11 = vld [vmem:[%s2627_s9 + $0x48] sm:$0xff] }
 0x20d   :  { %725 = vperm.xlu1 %1822, %v711_v17   ;;  %v704_v22 = vmul.f32 %v1844_v9, %v696_v18  ;;  %1851 = vrcp.f32 %v670_v20  ;;  %v1663_v42 = vpack.c.bf16 %v825_v41, %v824_v37  ;;  %v836_v7 = vld [vmem:[%s2627_s9 + $0x60] sm:$0xff]  ;;  %v838_v18 = vld [vmem:[%s2627_s9 + $0x70] sm:$0xff]  ;;  %v1036_v37 = vld [vmem:[%s2629_s11 + $0xa8] sm:$0xff] }
 0x20e   :  { %v697_v21 = vsub.f32 2.0, %v689_v23  ;;  %v676_v26 = vrot.slane %v675_v24, 1 }
 0x20f   :  { %v712_v3 = vmul.f32 %v2113_v51, %v704_v22  ;;  %1664 = vmatpush3.bf16.msra.mxu0 %v1663_v42  ;;  %v1020_v22 = vld [vmem:[%s2629_s11 + $0x28] sm:$0xff]  ;;  %v1035_v42 = vld [vmem:[%s2629_s11 + $0xa0] sm:$0xff] }
 0x210   :  { %v1848_v29 = vpop.eup %1847  ;;  %v705_v40 = vmul.f32 %v1846_v15, %v697_v21  ;;  %v677_v28 = vadd.f32 %v676_v26, %v675_v24  ;;  %1665 = vmatprep.subr.bf16.mxu0 %v1884_v46  ;;  %v837_v15 = vld [vmem:[%s2627_s9 + $0x68] sm:$0xff]  ;;  %v1015_v21 = vld [vmem:[%s2629_s11] sm:$0xff] }
 0x211   :  { %730 = vperm.xlu1 %1822, %v712_v3   ;;  %v690_v30 = vmul.f32 %v1848_v29, %v656_v59  ;;  %v1681_v17 = vpack.c.bf16 %v837_v15, %v836_v7  ;;  %v1016_v24 = vld [vmem:[%s2629_s11 + $0x8] sm:$0xff]  ;;  %v1019_v3 = vld [vmem:[%s2629_s11 + $0x20] sm:$0xff] }
 0x212   :  { %v713_v16 = vmul.f32 %v2117_v2, %v705_v40  ;;  %1853 = vrcp.f32 %v677_v28  ;;  %v1686_v26 = vpack.c.bf16 %v1020_v22, %v1016_v24  ;;  %v1024_v40 = vld [vmem:[%s2629_s11 + $0x48] sm:$0xff] }
 0x213   :  { %v1850_v34 = vpop.eup %1849  ;;  %v698_v32 = vsub.f32 2.0, %v690_v30  ;;  %1667 = vmatpush3.bf16.msra.mxu0 %v1666_v56  ;;  %v1023_v30 = vld [vmem:[%s2629_s11 + $0x40] sm:$0xff]  ;;  %v1052_v56 = vld [vmem:[%s2629_s11 + $0x128] sm:$0xff] }
 0x214   :  { %v691_v39 = vmul.f32 %v1850_v34, %v663_v6  ;;  %1668 = vmatprep.subr.bf16.mxu0 %v1884_v46  ;;  %v831_v6 = vld [vmem:[%s2627_s9 + $0x38] sm:$0xff]  ;;  %1687 = vmatprep.subr.bf16.mxu1 %v1686_v26 }
 0x215   :  { %735 = vperm.xlu1 %1822, %v713_v16   ;;  %v706_v51 = vmul.f32 %v1848_v29, %v698_v32  ;;  %v1672_v8 = vpack.c.bf16 %v831_v6, %v830_v5  ;;  %v1688_v29 = vpack.c.bf16 %v1019_v3, %v1015_v21  ;;  %v1027_v16 = vld [vmem:[%s2629_s11 + $0x60] sm:$0xff] }
 0x216   :  { %v699_v43 = vsub.f32 2.0, %v691_v39  ;;  %v1692_v32 = vpack.c.bf16 %v1027_v16, %v1023_v30  ;;  %v1032_v39 = vld [vmem:[%s2629_s11 + $0x88] sm:$0xff] }
 0x217   :  { %v1852_v47 = vpop.eup %1851  ;;  %v714_v2 = vmul.f32 %v2121_v19, %v706_v51  ;;  %1670 = vmatpush3.bf16.msra.mxu0 %v1669_v55  ;;  %1689 = vmatpush1.bf16.msra.mxu1 %v1688_v29  ;;  %v1694_v41 = vpack.c.bf16 %v1036_v37, %v1032_v39  ;;  %v1031_v51 = vld [vmem:[%s2629_s11 + $0x80] sm:$0xff] }
 0x218   :  { %v707_v48 = vmul.f32 %v1850_v34, %v699_v43  ;;  %v692_v49 = vmul.f32 %v1852_v47, %v670_v20  ;;  %1671 = vmatprep.subr.bf16.mxu0 %v1884_v46  ;;  %v839_v20 = vld [vmem:[%s2627_s9 + $0x78] sm:$0xff]  ;;  %v1696_v43 = vpack.c.bf16 %v1035_v42, %v1031_v51  ;;  %v1059_v55 = vld [vmem:[%s2629_s11 + $0x160] sm:$0xff] }
 0x219   :  { %740 = vperm.xlu1 %1822, %v714_v2   ;;  %v1684_v23 = vpack.c.bf16 %v839_v20, %v838_v18  ;;  %v1039_v2 = vld [vmem:[%s2629_s11 + $0xc0] sm:$0xff] }
 0x21a   :  { %v715_v57 = vmul.f32 %v2125_v27, %v707_v48  ;;  %v700_v59 = vsub.f32 2.0, %v692_v49  ;;  %v1043_v49 = vld [vmem:[%s2629_s11 + $0xe0] sm:$0xff] }
 0x21b   :  { %1673 = vmatpush3.bf16.msra.mxu0 %v1672_v8  ;;  %v1700_v31 = vpack.c.bf16 %v1043_v49, %v1039_v2 }
 0x21c   :  { %v1854_v60 = vpop.eup %1853  ;;  %v708_v19 = vmul.f32 %v1852_v47, %v700_v59  ;;  %1674 = vmatprep.subr.bf16.mxu0 %v1884_v46  ;;  %v1044_v47 = vld [vmem:[%s2629_s11 + $0xe8] sm:$0xff]  ;;  %v1702_v59 = vpack.c.bf16 %v1052_v56, %v1048_v54 }
 0x21d   :  { %745 = vperm.xlu1 %1822, %v715_v57   ;;  %v693_v61 = vmul.f32 %v1854_v60, %v677_v28  ;;  %v1028_v28 = vld [vmem:[%s2629_s11 + $0x68] sm:$0xff]  ;;  %v1047_v57 = vld [vmem:[%s2629_s11 + $0x100] sm:$0xff] }
 0x21e   :  { %v716_v53 = vmul.f32 %v2129_v36, %v708_v19  ;;  %v832_v36 = vld [vmem:[%s2627_s9 + $0x40] sm:$0xff]  ;;  %v1690_v34 = vpack.c.bf16 %v1028_v28, %v1024_v40 }
 0x21f   :  { %v701_v4 = vsub.f32 2.0, %v693_v61  ;;  %v1675_v12 = vpack.c.bf16 %v833_v11, %v832_v36  ;;  %v1056_v61 = vld [vmem:[%s2629_s11 + $0x148] sm:$0xff] }
 0x220   :  { %1691 = vmatprep.subr.bf16.mxu1 %v1690_v34 }
 0x221   :  { %750 = vperm.xlu1 %1822, %v716_v53   ;;  %v709_v27 = vmul.f32 %v1854_v60, %v701_v4  ;;  %1676 = vmatpush3.bf16.msra.mxu0 %v1675_v12  ;;  %v1051_v60 = vld [vmem:[%s2629_s11 + $0x120] sm:$0xff]  ;;  %v1706_v53 = vpack.c.bf16 %v1060_v63, %v1056_v61  ;;  %v1708_v4 = vpack.c.bf16 %v1059_v55, %v1055_v0 }
 0x222   :  { %1677 = vmatprep.subr.bf16.mxu0 %v1884_v46  ;;  %1693 = vmatpush1.bf16.msra.mxu1 %v1692_v32  ;;  %v1704_v19 = vpack.c.bf16 %v1051_v60, %v1047_v57 }
 0x223   :  { %v717_v9 = vmul.f32 %v2133_v50, %v709_v27  ;;  %v835_v50 = vld [vmem:[%s2627_s9 + $0x58] sm:$0xff]  ;;  %1695 = vmatprep.subr.bf16.mxu1 %v1694_v41  ;;  %v1473_v27 = vld [vmem:[%s2623_s5] ss:$0 sm:$0xff] }
 0x224   :  { %v1678_v14 = vpack.c.bf16 %v835_v50, %v834_v13  ;;  %v428_v5 = vadd.f32 %v1473_v27, %v2055_v38  ;;  %v429_v8 = vadd.f32 %v1473_v27, %v2061_v44  ;;  %v430_v12 = vadd.f32 %v1473_v27, %v2066_v52 }
 0x225   :  { %755 = vperm.xlu1 %1822, %v717_v9   ;;  %v431_v15 = vadd.f32 %v1473_v27, %v2073_v62  ;;  %v432_v44 = vadd.f32 %v1473_v27, %v2081_v10  ;;  %v433_v37 = vadd.f32 %v1473_v27, %v2089_v25  ;;  %v434_v10 = vadd.f32 %v1473_v27, %v2095_v45 }
 0x226   :  { %1679 = vmatpush3.bf16.msra.mxu0 %v1678_v14  ;;  %1697 = vmatpush1.bf16.msra.mxu1 %v1696_v43  ;;  %v436_v6 = vmax.f32 %v428_v5, 0.0  ;;  %v437_v11 = vmax.f32 %v429_v8, 0.0  ;;  %v435_v63 = vadd.f32 %v1473_v27, %v2100_v1 }
 0x227   :  { %1680 = vmatprep.subr.bf16.mxu0 %v1884_v46  ;;  %v439_v21 = vmax.f32 %v431_v15, 0.0  ;;  %v440_v34 = vmax.f32 %v432_v44, 0.0  ;;  %v441_v54 = vmax.f32 %v433_v37, 0.0  ;;  %v442_v25 = vmax.f32 %v434_v10, 0.0  ;;  %v1022_v37 = vld [vmem:[%s2629_s11 + $0x38] sm:$0xff] }
 0x22a   :  { %1682 = vmatpush3.bf16.msra.mxu0 %v1681_v17  ;;  %v438_v17 = vmax.f32 %v430_v12, 0.0 }
 0x22b   :  { %1683 = vmatprep.subr.bf16.mxu0 %v1884_v46  ;;  %v1040_v46 = vld [vmem:[%s2629_s11 + $0xc8] sm:$0xff] }
 0x22c   :  { %v1698_v48 = vpack.c.bf16 %v1044_v47, %v1040_v46 }
 0x22e   :  { %1685 = vmatpush3.bf16.msra.mxu0 %v1684_v23  ;;  %1699 = vmatprep.subr.bf16.mxu1 %v1698_v48 }
 0x22f   :  { %1625 = vmatprep.subr.mxu0 %v1882_v58  ;;  %1701 = vmatpush1.bf16.msra.mxu1 %v1700_v31 }
 0x230   :  { %1703 = vmatprep.subr.bf16.mxu1 %v1702_v59 }
 0x233   :  { %1705 = vmatpush1.bf16.msra.mxu1 %v1704_v19 }
 0x234   :  { %1707 = vmatprep.subr.bf16.mxu1 %v1706_v53 }
 0x237   :  { %1709 = vmatpush1.bf16.msra.mxu1 %v1708_v4 }
 0x288   :  { %v721_v9 = vpop.permute.xlu0 %720 }
 0x289   :  { %v758_v36 = vmul.f32 %v721_v9, %v436_v6 }
 0x28b   :  { %v766_v13 = vrot.slane %v758_v36, 4 }
 0x28c   :  { %v726_v50 = vpop.permute.xlu1 %725 }
 0x28d   :  { %v767_v14 = vadd.f32 %v766_v13, %v758_v36  ;;  %v759_v7 = vmul.f32 %v726_v50, %v437_v11  ;;  %v443_v11 = vmax.f32 %v435_v63, 0.0  ;;  %v1042_v63 = vld [vmem:[%s2629_s11 + $0xd8] sm:$0xff] }
 0x28f   :  { %v768_v18 = vrot.slane %v767_v14, 2  ;;  %v772_v20 = vrot.slane %v759_v7, 4 }
 0x290   :  { %v731_v23 = vpop.permute.xlu1 %730 }
 0x291   :  { %v769_v24 = vadd.f32 %v768_v18, %v767_v14  ;;  %v773_v38 = vadd.f32 %v772_v20, %v759_v7  ;;  %v760_v22 = vmul.f32 %v731_v23, %v438_v17 }
 0x293   :  { %v770_v26 = vrot.slane %v769_v24, 1  ;;  %v774_v3 = vrot.slane %v773_v38, 2  ;;  %v778_v29 = vrot.slane %v760_v22, 4 }
 0x294   :  { %v736_v52 = vpop.permute.xlu1 %735 }
 0x295   :  { %v775_v40 = vadd.f32 %v774_v3, %v773_v38  ;;  %v779_v28 = vadd.f32 %v778_v29, %v760_v22  ;;  %v761_v30 = vmul.f32 %v736_v52, %v439_v21  ;;  %v771_v16 = vadd.f32 %v770_v26, %v769_v24 }
 0x297   :  { %v776_v62 = vrot.slane %v775_v40, 1  ;;  %v780_v32 = vrot.slane %v779_v28, 2  ;;  %v784_v39 = vrot.slane %v761_v30, 4  ;;  %v814_v47 = vmul.f32 0.125, %v771_v16 }
 0x298   :  { %v741_v41 = vpop.permute.xlu1 %740 }
 0x299   :  { %v777_v51 = vadd.f32 %v776_v62, %v775_v40  ;;  %v781_v42 = vadd.f32 %v780_v32, %v779_v28  ;;  %v785_v43 = vadd.f32 %v784_v39, %v761_v30  ;;  %v762_v46 = vmul.f32 %v741_v41, %v440_v34  ;;  %v1018_v39 = vld [vmem:[%s2629_s11 + $0x18] sm:$0xff] }
 0x29b   :  { %v815_v2 = vmul.f32 0.125, %v777_v51  ;;  %v782_v48 = vrot.slane %v781_v42, 1  ;;  %v786_v49 = vrot.slane %v785_v43, 2  ;;  %v790_v31 = vrot.slane %v762_v46, 4  ;;  %v823_v51 = vld [vmem:[%s2626_s8] sm:$0xff] }
 0x29c   :  { %v746_v56 = vpop.permute.xlu1 %745 }
 0x29d   :  { %v849_v57 = vsel %vm848_vm4, %v815_v2, %v814_v47  ;;  %v783_v59 = vadd.f32 %v782_v48, %v781_v42  ;;  %v787_v60 = vadd.f32 %v786_v49, %v785_v43  ;;  %v791_v19 = vadd.f32 %v790_v31, %v762_v46  ;;  %v1017_v43 = vld [vmem:[%s2629_s11 + $0x10] sm:$0xff]  ;;  %v1026_v47 = vld [vmem:[%s2629_s11 + $0x58] sm:$0xff]  ;;  %v822_v48 = vld [vmem:[%s2619_s1] sm:$0xff] }
 0x29e   :  { %v763_v61 = vmul.f32 %v746_v56, %v441_v54  ;;  %v1718_v42 = vpack.c.bf16 %v1022_v37, %v1018_v39  ;;  %v1021_v46 = vld [vmem:[%s2629_s11 + $0x30] sm:$0xff]  ;;  %v1030_v2 = vld [vmem:[%s2629_s11 + $0x78] sm:$0xff] }
 0x29f   :  { %v816_v0 = vmul.f32 0.125, %v783_v59  ;;  %v788_v53 = vrot.slane %v787_v60, 1  ;;  %v792_v45 = vrot.slane %v791_v19, 2  ;;  %v1720_v49 = vpack.c.bf16 %v1021_v46, %v1017_v43  ;;  %v1025_v54 = vld [vmem:[%s2629_s11 + $0x50] sm:$0xff]  ;;  %v1038_v59 = vld [vmem:[%s2629_s11 + $0xb8] sm:$0xff]  ;;  %v1296_v46 = vld [vmem:[%s2631_s13 + $0x188] sm:$0xff] }
 0x2a0   :  { %v796_v55 = vrot.slane %v763_v61, 4  ;;  %v751_v4 = vpop.permute.xlu1 %750  ;;  %v1722_v31 = vpack.c.bf16 %v1030_v2, %v1026_v47  ;;  %v1029_v56 = vld [vmem:[%s2629_s11 + $0x70] sm:$0xff] }
 0x2a1   :  { %v851_v5 = vsel %vm850_vm5, %v816_v0, %v849_v57  ;;  %v789_v6 = vadd.f32 %v788_v53, %v787_v60  ;;  %v793_v8 = vadd.f32 %v792_v45, %v791_v19  ;;  %v764_v9 = vmul.f32 %v751_v4, %v442_v25  ;;  %v1034_v57 = vld [vmem:[%s2629_s11 + $0x98] sm:$0xff]  ;;  %v1033_v25 = vld [vmem:[%s2629_s11 + $0x90] sm:$0xff] }
 0x2a2   :  { %v797_v36 = vadd.f32 %v796_v55, %v763_v61  ;;  %v1724_v60 = vpack.c.bf16 %v1029_v56, %v1025_v54  ;;  %v1726_v19 = vpack.c.bf16 %v1038_v59, %v1034_v57  ;;  %v1037_v61 = vld [vmem:[%s2629_s11 + $0xb0] sm:$0xff]  ;;  %v1046_v0 = vld [vmem:[%s2629_s11 + $0xf8] sm:$0xff]  ;;  %v1248_v54 = vld [vmem:[%s2631_s13 + $0x8] sm:$0xff] }
 0x2a3   :  { %v817_v12 = vmul.f32 0.125, %v789_v6  ;;  %v794_v13 = vrot.slane %v793_v8, 1  ;;  %v802_v50 = vrot.slane %v764_v9, 4  ;;  %v1730_v53 = vpack.c.bf16 %v1046_v0, %v1042_v63  ;;  %v1041_v45 = vld [vmem:[%s2629_s11 + $0xd0] sm:$0xff]  ;;  %v1050_v4 = vld [vmem:[%s2629_s11 + $0x118] sm:$0xff]  ;;  %v1279_v59 = vld [vmem:[%s2631_s13 + $0x100] sm:$0xff] }
 0x2a4   :  { %v798_v14 = vrot.slane %v797_v36, 2  ;;  %v756_v7 = vpop.permute.xlu1 %755  ;;  %v1045_v55 = vld [vmem:[%s2629_s11 + $0xf0] sm:$0xff]  ;;  %v1298_v63 = vld [vmem:[%s2631_s13 + $0x198] sm:$0xff] }
 0x2a5   :  { %v795_v15 = vadd.f32 %v794_v13, %v793_v8  ;;  %v803_v17 = vadd.f32 %v802_v50, %v764_v9  ;;  %v765_v1 = vmul.f32 %v756_v7, %v443_v11  ;;  %v853_v27 = vsel %vm852_vm6, %v817_v12, %v851_v5  ;;  %v1054_v5 = vld [vmem:[%s2629_s11 + $0x138] sm:$0xff]  ;;  %v1049_v9 = vld [vmem:[%s2629_s11 + $0x110] sm:$0xff] }
 0x2a6   :  { %v799_v18 = vadd.f32 %v798_v14, %v797_v36  ;;  %v1732_v6 = vpack.c.bf16 %v1045_v55, %v1041_v45  ;;  %v1734_v8 = vpack.c.bf16 %v1054_v5, %v1050_v4  ;;  %v1053_v36 = vld [vmem:[%s2629_s11 + $0x130] sm:$0xff]  ;;  %v1058_v11 = vld [vmem:[%s2629_s11 + $0x158] sm:$0xff] }
 0x2a7   :  { %v818_v20 = vmul.f32 0.125, %v795_v15  ;;  %v804_v23 = vrot.slane %v803_v17, 2  ;;  %v808_v24 = vrot.slane %v765_v1, 4  ;;  %v1062_v12 = vld [vmem:[%s2629_s11 + $0x178] sm:$0xff]  ;;  %v1736_v13 = vpack.c.bf16 %v1053_v36, %v1049_v9  ;;  %v1057_v14 = vld [vmem:[%s2629_s11 + $0x150] sm:$0xff]  ;;  %v1267_v36 = vld [vmem:[%s2631_s13 + $0xa0] sm:$0xff] }
 0x2a8   :  { %v800_v38 = vrot.slane %v799_v18, 1  ;;  %v1738_v50 = vpack.c.bf16 %v1062_v12, %v1058_v11  ;;  %v1061_v7 = vld [vmem:[%s2629_s11 + $0x170] sm:$0xff]  ;;  %v1250_v55 = vld [vmem:[%s2631_s13 + $0x18] sm:$0xff]  ;;  %v1268_v11 = vld [vmem:[%s2631_s13 + $0xa8] sm:$0xff] }
 0x2a9   :  { %v805_v22 = vadd.f32 %v804_v23, %v803_v17  ;;  %v809_v21 = vadd.f32 %v808_v24, %v765_v1  ;;  %v855_v44 = vsel %vm854_vm7, %v818_v20, %v853_v27  ;;  %v1740_v15 = vpack.c.bf16 %v1061_v7, %v1057_v14  ;;  %v1064_v17 = vld [vmem:[%s2629_s11 + $0x188] sm:$0xff]  ;;  %v1063_v27 = vld [vmem:[%s2629_s11 + $0x180] sm:$0xff]  ;;  %v1066_v23 = vld [vmem:[%s2629_s11 + $0x198] sm:$0xff] }
 0x2aa   :  { %v801_v26 = vadd.f32 %v800_v38, %v799_v18  ;;  %v1068_v1 = vld [vmem:[%s2629_s11 + $0x1a8] sm:$0xff]  ;;  %v1067_v20 = vld [vmem:[%s2629_s11 + $0x1a0] sm:$0xff]  ;;  %v1070_v24 = vld [vmem:[%s2629_s11 + $0x1b8] sm:$0xff] }
 0x2ab   :  { %v806_v3 = vrot.slane %v805_v22, 1  ;;  %v810_v29 = vrot.slane %v809_v21, 2  ;;  %v1710_v18 = vpack.c.bf16 %v1068_v1, %v1064_v17  ;;  %v1712_v38 = vpack.c.bf16 %v1067_v20, %v1063_v27  ;;  %v1249_v45 = vld [vmem:[%s2631_s13 + $0x10] sm:$0xff]  ;;  %v1282_v9 = vld [vmem:[%s2631_s13 + $0x118] sm:$0xff]  ;;  %v1299_v12 = vld [vmem:[%s2631_s13 + $0x1a0] sm:$0xff] }
 0x2ac   :  { %v819_v52 = vmul.f32 0.125, %v801_v26  ;;  %v1251_v7 = vld [vmem:[%s2631_s13 + $0x20] sm:$0xff]  ;;  %v1758_v17 = vpack.c.bf16 %v1268_v11, %v1267_v36  ;;  %v1269_v20 = vld [vmem:[%s2631_s13 + $0xb0] sm:$0xff]  ;;  %v1278_v11 = vld [vmem:[%s2631_s13 + $0xf8] sm:$0xff] }
 0x2ad   :  { %v807_v40 = vadd.f32 %v806_v3, %v805_v22  ;;  %v811_v28 = vadd.f32 %v810_v29, %v809_v21  ;;  %v1742_v22 = vpack.c.bf16 %v1070_v24, %v1066_v23  ;;  %v1065_v21 = vld [vmem:[%s2629_s11 + $0x190] sm:$0xff]  ;;  %1711 = vmatprep.subr.bf16.mxu1 %v1710_v18  ;;  %v1072_v3 = vld [vmem:[%s2629_s11 + $0x1c8] sm:$0xff]  ;;  %v1283_v27 = vld [vmem:[%s2631_s13 + $0x120] sm:$0xff] }
 0x2ae   :  { %v857_v30 = vsel %vm856_vm8, %v819_v52, %v855_v44  ;;  %v1069_v44 = vld [vmem:[%s2629_s11 + $0x1b0] sm:$0xff]  ;;  %1713 = vmatpush1.bf16.msra.mxu1 %v1712_v38  ;;  %v1076_v29 = vld [vmem:[%s2629_s11 + $0x1e8] sm:$0xff]  ;;  %v1270_v23 = vld [vmem:[%s2631_s13 + $0xb8] sm:$0xff] }
 0x2af   :  { %v820_v16 = vmul.f32 0.125, %v807_v40  ;;  %v812_v34 = vrot.slane %v811_v28, 1  ;;  %v1744_v26 = vpack.c.bf16 %v1069_v44, %v1065_v21  ;;  %v1714_v52 = vpack.c.bf16 %v1076_v29, %v1072_v3  ;;  %v1071_v40 = vld [vmem:[%s2629_s11 + $0x1c0] sm:$0xff]  ;;  %v1284_v18 = vld [vmem:[%s2631_s13 + $0x128] sm:$0xff]  ;;  %v1301_v24 = vld [vmem:[%s2631_s13 + $0x1b0] sm:$0xff] }
 0x2b0   :  { %v1302_v38 = vld [vmem:[%s2631_s13 + $0x1b8] sm:$0xff]  ;;  %v1792_v21 = vpack.c.bf16 %v1284_v18, %v1283_v27  ;;  %v1253_v44 = vld [vmem:[%s2631_s13 + $0x30] sm:$0xff]  ;;  %v1762_v3 = vpack.c.bf16 %v1270_v23, %v1269_v20  ;;  %v1091_v20 = vsub.s32 2, %v2049_v33  ;;  %v1079_v23 = vld [vmem:[%s2630_s12] sm:$0xf] }
 0x2b1   :  { %v813_v62 = vadd.f32 %v812_v34, %v811_v28  ;;  %v859_v32 = vsel %vm858_vm9, %v820_v16, %v857_v30  ;;  %v1075_v28 = vld [vmem:[%s2629_s11 + $0x1e0] sm:$0xff]  ;;  %v1074_v30 = vld [vmem:[%s2629_s11 + $0x1d8] sm:$0xff]  ;;  %1715 = vmatprep.subr.bf16.mxu1 %v1714_v52  ;;  %v1794_v29 = vpack.c.bf16 %v1302_v38, %v1301_v24  ;;  %v1285_v52 = vld [vmem:[%s2631_s13 + $0x130] sm:$0xff]  ;;  %v1087_v24 = vsub.s32 1, %v2049_v33 }
 0x2b2   :  { %v1716_v16 = vpack.c.bf16 %v1075_v28, %v1071_v40  ;;  %v1078_v34 = vld [vmem:[%s2629_s11 + $0x1f8] sm:$0xff]  ;;  %v1271_v28 = vld [vmem:[%s2631_s13 + $0xc0] sm:$0xff]  ;;  %v1277_v36 = vld [vmem:[%s2631_s13 + $0xf0] sm:$0xff]  ;;  %v1095_v38 = vsub.s32 3, %v2049_v33 }
 0x2b3   :  { %v821_v41 = vmul.f32 0.125, %v813_v62  ;;  %v1073_v62 = vld [vmem:[%s2629_s11 + $0x1d0] sm:$0xff]  ;;  %v1746_v39 = vpack.c.bf16 %v1078_v34, %v1074_v30  ;;  %v1286_v40 = vld [vmem:[%s2631_s13 + $0x138] sm:$0xff]  ;;  %v1272_v30 = vld [vmem:[%s2631_s13 + $0xc8] sm:$0xff] }
 0x2b4   :  { %1717 = vmatpush1.bf16.msra.mxu1 %v1716_v16  ;;  %v1303_v16 = vld [vmem:[%s2631_s13 + $0x1c0] sm:$0xff]  ;;  %v1304_v34 = vld [vmem:[%s2631_s13 + $0x1c8] sm:$0xff]  ;;  %v1294_v27 = vld [vmem:[%s2631_s13 + $0x178] sm:$0xff] }
 0x2b5   :  { %v861_v10 = vsel %vm860_vm10, %v821_v41, %v859_v32  ;;  %v1077_v32 = vld [vmem:[%s2629_s11 + $0x1f0] sm:$0xff]  ;;  %v1263_v41 = vld [vmem:[%s2631_s13 + $0x80] sm:$0xff] }
 0x2b6   :  { %1623 = vmatmul.mubr.f32.vlgmr.msra.gmra.mrb[0].mxu0 %v861_v10  ;;  %v1748_v37 = vpack.c.bf16 %v1077_v32, %v1073_v62  ;;  %v1796_v32 = vpack.c.bf16 %v1286_v40, %v1285_v52 }
 0x2b7   :  { %1626 = vmatpush3.msra.mxu0 %v823_v51  ;;  %1627 = vmatprep.mubr.msk.f32.mxu0 %vm1885_vm3, %v1882_v58  ;;  %v1264_v51 = vld [vmem:[%s2631_s13 + $0x88] sm:$0xff] }
 0x2b8   :  { %1719 = vmatprep.subr.bf16.mxu0 %v1718_v42  ;;  %v1295_v42 = vld [vmem:[%s2631_s13 + $0x180] sm:$0xff]  ;;  %v1750_v43 = vpack.c.bf16 %v1264_v51, %v1263_v41  ;;  %v1766_v41 = vpack.c.bf16 %v1272_v30, %v1271_v28  ;;  %v1798_v51 = vpack.c.bf16 %v1304_v34, %v1303_v16 }
 0x2b9   :  { %v1782_v10 = vpack.c.bf16 %v1296_v46, %v1295_v42  ;;  %v1287_v42 = vld [vmem:[%s2631_s13 + $0x140] sm:$0xff]  ;;  %v1273_v46 = vld [vmem:[%s2631_s13 + $0xd0] sm:$0xff] }
 0x2ba   :  { %1628 = vmatmul.mubr.msk.f32.vlgmr.msra.gmra.mrb[2].mxu0 %vm82_vm0, %v822_v48  ;;  %1751 = vmatprep.subr.bf16.mxu1 %v1750_v43  ;;  %v1288_v43 = vld [vmem:[%s2631_s13 + $0x148] sm:$0xff] }
 0x2bb   :  { %1721 = vmatpush1.bf16.msra.mxu0 %v1720_v49  ;;  %1236 = vmatprep.mubr.f32.mxu0 %v1882_v58  ;;  %v1728_v58 = vpack.c.bf16 %v1037_v61, %v1033_v25  ;;  %v1476_v49 = vld [vmem:[%s2628_s10] ss:$0 sm:$0xff]  ;;  %v1266_v25 = vld [vmem:[%s2631_s13 + $0x98] sm:$0xff]  ;;  %v1297_v61 = vld [vmem:[%s2631_s13 + $0x190] sm:$0xff] }
 0x2bc   :  { %1723 = vmatprep.subr.bf16.mxu0 %v1722_v31  ;;  %v1247_v31 = vld [vmem:[%s2631_s13] sm:$0xff] }
 0x2bf   :  { %1725 = vmatpush1.bf16.msra.mxu0 %v1724_v60  ;;  %v1280_v60 = vld [vmem:[%s2631_s13 + $0x108] sm:$0xff] }
 0x2c0   :  { %1727 = vmatprep.subr.bf16.mxu0 %v1726_v19  ;;  %v1265_v19 = vld [vmem:[%s2631_s13 + $0x90] sm:$0xff] }
 0x2c1   :  { %v1754_v5 = vpack.c.bf16 %v1266_v25, %v1265_v19  ;;  %v1275_v19 = vld [vmem:[%s2631_s13 + $0xe0] sm:$0xff]  ;;  %v1276_v25 = vld [vmem:[%s2631_s13 + $0xe8] sm:$0xff] }
 0x2c3   :  { %1729 = vmatpush1.bf16.msra.mxu0 %v1728_v58  ;;  %v1752_v58 = vpack.c.bf16 %v1248_v54, %v1247_v31  ;;  %v1257_v31 = vld [vmem:[%s2631_s13 + $0x50] sm:$0xff]  ;;  %v1258_v54 = vld [vmem:[%s2631_s13 + $0x58] sm:$0xff] }
 0x2c4   :  { %1731 = vmatprep.subr.bf16.mxu0 %v1730_v53  ;;  %v1784_v53 = vpack.c.bf16 %v1280_v60, %v1279_v59  ;;  %v1289_v59 = vld [vmem:[%s2631_s13 + $0x150] sm:$0xff]  ;;  %v1290_v60 = vld [vmem:[%s2631_s13 + $0x158] sm:$0xff] }
 0x2c7   :  { %1733 = vmatpush1.bf16.msra.mxu0 %v1732_v6  ;;  %v1786_v6 = vpack.c.bf16 %v1298_v63, %v1297_v61  ;;  %v1307_v61 = vld [vmem:[%s2631_s13 + $0x1e0] sm:$0xff]  ;;  %v1308_v63 = vld [vmem:[%s2631_s13 + $0x1e8] sm:$0xff] }
 0x2c8   :  { %1735 = vmatprep.subr.bf16.mxu0 %v1734_v8  ;;  %v1281_v8 = vld [vmem:[%s2631_s13 + $0x110] sm:$0xff] }
 0x2c9   :  { %v1788_v14 = vpack.c.bf16 %v1282_v9, %v1281_v8  ;;  %v1292_v8 = vld [vmem:[%s2631_s13 + $0x168] sm:$0xff] }
 0x2cb   :  { %1737 = vmatpush1.bf16.msra.mxu0 %v1736_v13  ;;  %v1300_v13 = vld [vmem:[%s2631_s13 + $0x1a8] sm:$0xff] }
 0x2cc   :  { %1739 = vmatprep.subr.bf16.mxu0 %v1738_v50  ;;  %v1756_v50 = vpack.c.bf16 %v1250_v55, %v1249_v45  ;;  %v1790_v1 = vpack.c.bf16 %v1300_v13, %v1299_v12  ;;  %v1806_v45 = vpack.c.bf16 %v1308_v63, %v1307_v61  ;;  %v1259_v55 = vld [vmem:[%s2631_s13 + $0x60] sm:$0xff]  ;;  %v1309_v12 = vld [vmem:[%s2631_s13 + $0x1f0] sm:$0xff]  ;;  %v1778_v13 = vpack.c.bf16 %v1278_v11, %v1277_v36 }
 0x2cf   :  { %1741 = vmatpush1.bf16.msra.mxu0 %v1740_v15  ;;  %v1252_v15 = vld [vmem:[%s2631_s13 + $0x28] sm:$0xff] }
 0x2d0   :  { %1743 = vmatprep.subr.bf16.mxu0 %v1742_v22  ;;  %v1760_v22 = vpack.c.bf16 %v1252_v15, %v1251_v7  ;;  %v1262_v7 = vld [vmem:[%s2631_s13 + $0x78] sm:$0xff] }
 0x2d3   :  { %1745 = vmatpush1.bf16.msra.mxu0 %v1744_v26  ;;  %v1254_v26 = vld [vmem:[%s2631_s13 + $0x38] sm:$0xff] }
 0x2d4   :  { %1747 = vmatprep.subr.bf16.mxu0 %v1746_v39  ;;  %v1764_v62 = vpack.c.bf16 %v1254_v26, %v1253_v44  ;;  %v1255_v39 = vld [vmem:[%s2631_s13 + $0x40] sm:$0xff]  ;;  %v1088_v44 = vrot.slane %v1079_v23, %v1087_v24  ;;  %v1096_v26 = vrot.slane %v1079_v23, %v1095_v38 }
 0x2d7   :  { %1749 = vmatpush1.bf16.msra.mxu0 %v1748_v37  ;;  %v1256_v37 = vld [vmem:[%s2631_s13 + $0x48] sm:$0xff] }
 0x2d8   :  { %1783 = vmatprep.subr.bf16.mxu0 %v1782_v10  ;;  %v1274_v10 = vld [vmem:[%s2631_s13 + $0xd8] sm:$0xff] }
 0x389   :  { %v929_v47 = vpop.f32.mrb[0].mxu0 }
 0x38a   :  { %v1624_v2 = vpop.f32.mrb[1].mxu0 }
 0x38b   :  { %v1306_v2 = vld [vmem:[%s2631_s13 + $0x1d8] sm:$0xff] }
 0x38d   :  { %v1002_v48 = vpop.f32.mrb[2].mxu0 }
 0x38e   :  { %v1003_v56 = vadd.f32 %v1002_v48, %v929_v47  ;;  %v1629_v57 = vpop.f32.mrb[3].mxu0  ;;  %v1305_v47 = vld [vmem:[%s2631_s13 + $0x1d0] sm:$0xff]  ;;  %v1768_v48 = vpack.c.bf16 %v1256_v37, %v1255_v39 }
 0x38f   :  { %v1802_v57 = vpack.c.bf16 %v1306_v2, %v1305_v47 }
 0x390   :  { %v1013_v0 = vadd.f32 %v1476_v49, %v1003_v56  ;;  %v1800_v49 = vpack.c.bf16 %v1288_v43, %v1287_v42  ;;  %v1770_v56 = vpack.c.bf16 %v1274_v10, %v1273_v46 }
 0x392   :  { %v1014_v4 = vmax.f32 %v1013_v0, 0.0  ;;  %v1772_v0 = vpack.c.bf16 %v1258_v54, %v1257_v31 }
 0x394   :  { %1166 = vmatmul.mubr.f32.vlgmr.msra.gmra.mrb[24].mxu1 %v1014_v4  ;;  %1237 = vmatmul.mubr.f32.vlgmr.msra.gmra.mrb[4].mxu0 %v1014_v4  ;;  %v1260_v4 = vld [vmem:[%s2631_s13 + $0x68] sm:$0xff] }
 0x395   :  { %1753 = vmatpush3.bf16.msra.mxu1 %v1752_v58  ;;  %1785 = vmatpush3.bf16.msra.mxu0 %v1784_v53  ;;  %v1804_v58 = vpack.c.bf16 %v1290_v60, %v1289_v59  ;;  %v1774_v53 = vpack.c.bf16 %v1276_v25, %v1275_v19 }
 0x396   :  { %1755 = vmatprep.subr.bf16.mxu1 %v1754_v5  ;;  %1787 = vmatprep.subr.bf16.mxu0 %v1786_v6  ;;  %v1291_v5 = vld [vmem:[%s2631_s13 + $0x160] sm:$0xff]  ;;  %v1776_v6 = vpack.c.bf16 %v1260_v4, %v1259_v55 }
 0x397   :  { %v1808_v9 = vpack.c.bf16 %v1292_v8, %v1291_v5 }
 0x399   :  { %1757 = vmatpush3.bf16.msra.mxu1 %v1756_v50  ;;  %1789 = vmatpush3.bf16.msra.mxu0 %v1788_v14  ;;  %v1310_v50 = vld [vmem:[%s2631_s13 + $0x1f8] sm:$0xff]  ;;  %v1261_v14 = vld [vmem:[%s2631_s13 + $0x70] sm:$0xff] }
 0x39a   :  { %1759 = vmatprep.subr.bf16.mxu1 %v1758_v17  ;;  %1791 = vmatprep.subr.bf16.mxu0 %v1790_v1  ;;  %v1810_v15 = vpack.c.bf16 %v1310_v50, %v1309_v12  ;;  %v1780_v17 = vpack.c.bf16 %v1262_v7, %v1261_v14  ;;  %v1293_v1 = vld [vmem:[%s2631_s13 + $0x170] sm:$0xff] }
 0x39b   :  { %v1812_v18 = vpack.c.bf16 %v1294_v27, %v1293_v1 }
 0x39d   :  { %1761 = vmatpush3.bf16.msra.mxu1 %v1760_v22  ;;  %1793 = vmatpush3.bf16.msra.mxu0 %v1792_v21  ;;  %v1084_v22 = vrot.slane %v1079_v23, %v2052_v35  ;;  %v1092_v21 = vrot.slane %v1079_v23, %v1091_v20 }
 0x39e   :  { %1763 = vmatprep.subr.bf16.mxu1 %v1762_v3  ;;  %1795 = vmatprep.subr.bf16.mxu0 %v1794_v29 }
 0x3a1   :  { %1765 = vmatpush3.bf16.msra.mxu1 %v1764_v62  ;;  %1797 = vmatpush3.bf16.msra.mxu0 %v1796_v32 }
 0x3a2   :  { %1767 = vmatprep.subr.bf16.mxu1 %v1766_v41  ;;  %1799 = vmatprep.subr.bf16.mxu0 %v1798_v51  ;;  %v1477_v41 = vld [vmem:[%s2632_s14] ss:$0 sm:$0xff] }
 0x3a5   :  { %1769 = vmatpush3.bf16.msra.mxu1 %v1768_v48  ;;  %1801 = vmatpush3.bf16.msra.mxu0 %v1800_v49 }
 0x3a6   :  { %1771 = vmatprep.subr.bf16.mxu1 %v1770_v56  ;;  %1803 = vmatprep.subr.bf16.mxu0 %v1802_v57 }
 0x3a9   :  { %1773 = vmatpush3.bf16.msra.mxu1 %v1772_v0  ;;  %1805 = vmatpush3.bf16.msra.mxu0 %v1804_v58 }
 0x3aa   :  { %1775 = vmatprep.subr.bf16.mxu1 %v1774_v53  ;;  %1807 = vmatprep.subr.bf16.mxu0 %v1806_v45 }
 0x3ad   :  { %1777 = vmatpush3.bf16.msra.mxu1 %v1776_v6  ;;  %1809 = vmatpush3.bf16.msra.mxu0 %v1808_v9 }
 0x3ae   :  { %1779 = vmatprep.subr.bf16.mxu1 %v1778_v13  ;;  %1811 = vmatprep.subr.bf16.mxu0 %v1810_v15 }
 0x3b1   :  { %1781 = vmatpush3.bf16.msra.mxu1 %v1780_v17  ;;  %1813 = vmatpush3.bf16.msra.mxu0 %v1812_v18 }
 0x467   :  { %v1167_v3 = vpop.f32.mrb[24].mxu1  ;;  %v1238_v29 = vpop.f32.mrb[4].mxu0 }
 0x468   :  { %v1168_v52 = vadd.f32 %v1167_v3, %v1084_v22  ;;  %v1239_v40 = vadd.f32 %v1238_v29, %v1092_v21  ;;  %v1169_v28 = vpop.f32.mrb[25].mxu1  ;;  %v1240_v30 = vpop.f32.mrb[5].mxu0 }
 0x469   :  { %v1170_v16 = vadd.f32 %v1169_v28, %v1088_v44  ;;  %v1241_v34 = vadd.f32 %v1240_v30, %v1096_v26 }
 0x46a   :  { %v1243_v39 = vmax.f32 %v1168_v52, 0.0  ;;  %v1245_v37 = vmax.f32 %v1239_v40, 0.0 }
 0x46b   :  { %v1244_v62 = vmax.f32 %v1170_v16, 0.0  ;;  %v1246_v32 = vmax.f32 %v1241_v34, 0.0 }
 0x46d   :  { %1382 = vmatprep.mubr.f32.mxu1 %v1244_v62  ;;  %1452 = vmatprep.mubr.f32.mxu0 %v1246_v32 }
 0x46e   :  { %1383 = vmatmul.mubr.f32.vlgmr.msra.gmra.mrb[26].mxu1 %v1243_v39  ;;  %1453 = vmatmul.mubr.f32.vlgmr.msra.gmra.mrb[6].mxu0 %v1245_v37 }
 0x541   :  { %v1538_v33 = vpop.f32.mrb[26].mxu1  ;;  %v1573_v35 = vpop.f32.mrb[6].mxu0 }
 0x542   :  { %v1539_v51 = vpop.f32.mrb[27].mxu1  ;;  %v1574_v42 = vpop.f32.mrb[7].mxu0 }
 0x543   :  { %v1540_v43 = vadd.f32 %v1539_v51, %v1538_v33  ;;  %v1575_v46 = vadd.f32 %v1574_v42, %v1573_v35 }
 0x545   :  { %v1385_v10 = vadd.f32 %v1540_v43, %v1477_v41 }
 0x547   :  { %v1455_v47 = vadd.f32 %v1575_v46, %v1385_v10 }
 0x549   :  { %1458 = vst.msk [vmem:[%s2633_s15] sm:$0xff] %vm82_vm0, %v1455_v47 }
 0x54a   :  { %1463 = vsyncpa [#allocation4], 1 }

</bundles_post_ra>
